<compile_context>
chip_gen: v7x
topology: tpu7x:2x2x1
jax: 0.10.0
libtpu: 0.0.40
codegen_flags: <defaults>
</compile_context>

<pallas_src>
import functools

import jax
import jax.numpy as jnp
from jax.experimental import pallas as pl
from jax.experimental.pallas import tpu as pltpu


def _conv_bn_relu_kernel(x_ref, w_ref, b_ref, o_ref, *, KH, KW, Cin, TH, W_out,
                         stride, dilation, apply_relu):
    # x_ref: (1, H_pad, W_pad, Cin)  whole padded image (resident per batch n)
    # w_ref: (KH*KW*Cin, Cout)       BN-folded weight (resident, DMA'd once)
    # b_ref: (1, Cout)               folded bias (resident, f32)
    # o_ref: (TH*W_out, Cout)        output row tile
    ht = pl.program_id(1)
    row0 = pl.multiple_of(ht * (TH * stride), TH * stride)

    cout = o_ref.shape[-1]
    acc = jnp.zeros((TH * W_out, cout), jnp.float32)

    # In-kernel im2col: accumulate one small matmul per (kh, kw) tap.
    for kh in range(KH):
        if stride == 1:
            rows = pl.ds(row0 + kh * dilation, TH)
        else:
            rows = pl.ds(row0 + kh * dilation, TH, stride)
        for kw in range(KW):
            if stride == 1:
                cols = slice(kw * dilation, kw * dilation + W_out)
            else:
                cols = pl.ds(kw * dilation, W_out, stride)
            patch = x_ref[0, rows, cols, :]                  # (TH, W_out, Cin)
            patch = patch.reshape(TH * W_out, Cin)
            t = kh * KW + kw
            w_tap = w_ref[t * Cin:(t + 1) * Cin, :]          # (Cin, Cout)
            acc += jnp.dot(patch, w_tap, preferred_element_type=jnp.float32)

    y = acc + b_ref[...]
    if apply_relu:
        y = jnp.maximum(y, 0.0)
    o_ref[...] = y.astype(o_ref.dtype)


def basic_conv_forward(x_nchw, weight_oihw, bn_gamma=None, bn_beta=None,
                       bn_mean=None, bn_var=None, conv_bias=None, *,
                       stride=1, padding=0, dilation=1, groups=1,
                       eps=1e-5, relu=True, bn=True,
                       compute_dtype=jnp.bfloat16, out_dtype=jnp.float32,
                       target_rows=512):
    """BasicConv forward: Conv2d + (eval-mode) BatchNorm2d + ReLU.

    x_nchw:      (N, Cin, H, W)       float32 (PyTorch layout)
    weight_oihw: (Cout, Cin, KH, KW)  float32 (PyTorch conv weight layout)
    returns      (N, Cout, H_out, W_out) out_dtype
    """
    if groups != 1:
        raise NotImplementedError("groups != 1 is not supported by this kernel")

    N, Cin, H, W = x_nchw.shape
    Cout, Cin_w, KH, KW = weight_oihw.shape
    assert Cin_w == Cin, (Cin_w, Cin)

    H_out = (H + 2 * padding - dilation * (KH - 1) - 1) // stride + 1
    W_out = (W + 2 * padding - dilation * (KW - 1) - 1) // stride + 1

    # ---- output-row tiling: ~target_rows rows/step, sublane (8) aligned ----
    TH = max(1, min(H_out, target_rows // max(1, W_out)))
    while (TH * W_out) % 8:
        TH += 1
    HT = -(-H_out // TH)                  # h tiles per image
    H_out_pad = HT * TH                   # extra rows read zero-padding, sliced off

    # ---- wrapper-side layout glue (NCHW -> NHWC, zero pad) ----------------
    x_nhwc = jnp.transpose(x_nchw, (0, 2, 3, 1))
    H_need = (H_out_pad - 1) * stride + (KH - 1) * dilation + 1
    pad_h_hi = padding + max(0, H_need - (H + 2 * padding))
    x_pad = jnp.pad(x_nhwc, ((0, 0), (padding, pad_h_hi),
                             (padding, padding), (0, 0)))
    x_pad = x_pad.astype(compute_dtype)
    H_pad, W_pad = x_pad.shape[1], x_pad.shape[2]

    # ---- weight: OIHW -> (K, Cout), fold eval-mode BN scale / bias --------
    K = KH * KW * Cin
    w = jnp.transpose(weight_oihw.astype(jnp.float32), (2, 3, 1, 0)).reshape(K, Cout)
    if bn:
        scale = bn_gamma.astype(jnp.float32) / jnp.sqrt(bn_var.astype(jnp.float32) + eps)
        bias = bn_beta.astype(jnp.float32) - bn_mean.astype(jnp.float32) * scale
    else:
        scale = jnp.ones((Cout,), jnp.float32)
        bias = jnp.zeros((Cout,), jnp.float32)
    if conv_bias is not None:
        bias = bias + conv_bias.astype(jnp.float32) * scale
    w = (w * scale[None, :]).astype(compute_dtype)     # K unpadded in HBM
    bias = bias.reshape(1, Cout)                        # f32 epilogue bias

    M = N * H_out_pad * W_out

    kernel = functools.partial(_conv_bn_relu_kernel, KH=KH, KW=KW, Cin=Cin,
                               TH=TH, W_out=W_out, stride=stride,
                               dilation=dilation, apply_relu=relu)

    out = pl.pallas_call(
        kernel,
        out_shape=jax.ShapeDtypeStruct((M, Cout), out_dtype),
        grid_spec=pltpu.PrefetchScalarGridSpec(
            num_scalar_prefetch=0,
            grid=(N, HT),
            in_specs=[
                # Whole padded image; block index depends only on n, so it is
                # DMA'd once per image and stays resident across h tiles.
                pl.BlockSpec((1, H_pad, W_pad, Cin), lambda n, h: (n, 0, 0, 0)),
                # Folded weight / bias: constant index -> single DMA, resident.
                pl.BlockSpec((K, Cout), lambda n, h: (0, 0)),
                pl.BlockSpec((1, Cout), lambda n, h: (0, 0)),
            ],
            out_specs=pl.BlockSpec((TH * W_out, Cout),
                                   lambda n, h: (n * HT + h, 0)),
        ),
        compiler_params=pltpu.CompilerParams(
            dimension_semantics=("parallel", "parallel")),
    )(x_pad, w, bias)

    out = out.reshape(N, H_out_pad, W_out, Cout)[:, :H_out]
    return jnp.transpose(out, (0, 3, 1, 2))


def _reference_forward(x_nchw, weight_oihw, gamma, beta, mean, var,
                       *, stride=1, padding=0, dilation=1,
                       eps=1e-5, relu=True):
    y = jax.lax.conv_general_dilated(
        x_nchw, weight_oihw, window_strides=(stride, stride),
        padding=[(padding, padding), (padding, padding)],
        rhs_dilation=(dilation, dilation),
        dimension_numbers=("NCHW", "OIHW", "NCHW"))
    scale = gamma / jnp.sqrt(var + eps)
    y = y * scale[None, :, None, None] + (beta - mean * scale)[None, :, None, None]
    if relu:
        y = jnp.maximum(y, 0.0)
    return y


if __name__ == "__main__":
    # BasicConv(in_planes=4, out_planes=8, kernel_size=3, padding=1)
    N, Cin, H, W = 2, 4, 16, 16
    Cout, KH, KW = 8, 3, 3
    padding = 1

    key = jax.random.PRNGKey(0)
    kx, kw_, kg, kb, km, kv = jax.random.split(key, 6)

    x = jax.random.normal(kx, (N, Cin, H, W), dtype=jnp.float32)
    weight = jax.random.normal(kw_, (Cout, Cin, KH, KW), dtype=jnp.float32) * 0.1
    gamma = 1.0 + 0.1 * jax.random.normal(kg, (Cout,), dtype=jnp.float32)
    beta = 0.1 * jax.random.normal(kb, (Cout,), dtype=jnp.float32)
    running_mean = 0.1 * jax.random.normal(km, (Cout,), dtype=jnp.float32)
    running_var = 0.5 + jax.random.uniform(kv, (Cout,), dtype=jnp.float32)

    ref = _reference_forward(x, weight, gamma, beta, running_mean, running_var,
                             padding=padding, relu=True)

    # f32 compute path: bit-level agreement with the XLA conv reference.
    out_f32 = basic_conv_forward(x, weight, gamma, beta, running_mean, running_var,
                                 padding=padding, relu=True,
                                 compute_dtype=jnp.float32)
    out_f32 = jax.block_until_ready(out_f32)
    assert out_f32.shape == (N, Cout, H, W), out_f32.shape
    assert jnp.allclose(out_f32, ref, atol=1e-4, rtol=1e-4), \
        float(jnp.max(jnp.abs(out_f32 - ref)))

    # Default bf16 compute path (f32 accumulate): bf16-level error vs f32 ref.
    out_bf16 = basic_conv_forward(x, weight, gamma, beta, running_mean, running_var,
                                  padding=padding, relu=True)
    out_bf16 = jax.block_until_ready(out_bf16)
    assert out_bf16.shape == (N, Cout, H, W), out_bf16.shape
    assert jnp.allclose(out_bf16, ref, atol=3e-2, rtol=3e-2), \
        float(jnp.max(jnp.abs(out_bf16 - ref)))

    print("KERNEL_OK")
</pallas_src>

<mosaic_0001>
module attributes {stable_mosaic.version = 11 : i64} {
  func.func @_conv_bn_relu_kernel(%arg0: i32, %arg1: i32, %arg2: memref<1x18x18x4xf32, #tpu.memory_space<vmem>>, %arg3: memref<36x8xf32, #tpu.memory_space<vmem>>, %arg4: memref<1x8xf32, #tpu.memory_space<vmem>>, %arg5: memref<256x8xf32, #tpu.memory_space<vmem>>) attributes {dimension_semantics = [#tpu.dimension_semantics<parallel>, #tpu.dimension_semantics<parallel>], iteration_bounds = array<i64: 2, 1>, scalar_prefetch = 0 : i64, scratch_operands = 0 : i64, tpu.core_type = #tpu.core_type<tc>, window_params = [{transform_indices = @transform_0, window_bounds = array<i64: 1, 18, 18, 4>}, {pipeline_mode = #tpu.pipeline_mode<synchronous>, transform_indices = @transform_1, window_bounds = array<i64: 36, 8>}, {pipeline_mode = #tpu.pipeline_mode<synchronous>, transform_indices = @transform_2, window_bounds = array<i64: 1, 8>}, {transform_indices = @transform_3, window_bounds = array<i64: 256, 8>}]} {
    %c16_i32 = arith.constant 16 : i32
    %0 = arith.muli %arg1, %c16_i32 : i32
    %1 = tpu.assume_multiple %0, 16 : i32
    %cst = arith.constant 0.000000e+00 : f32
    %2 = vector.broadcast %cst : f32 to vector<256x8xf32>
    %c0_i32 = arith.constant 0 : i32
    %3 = arith.addi %1, %c0_i32 : i32
    %c0 = arith.constant 0 : index
    %4 = arith.index_cast %3 : i32 to index
    %c0_0 = arith.constant 0 : index
    %c0_1 = arith.constant 0 : index
    %5 = vector.load %arg2[%c0, %4, %c0_0, %c0_1] : memref<1x18x18x4xf32, #tpu.memory_space<vmem>>, vector<1x16x16x4xf32>
    %6 = vector.shape_cast %5 : vector<1x16x16x4xf32> to vector<16x16x4xf32>
    %7 = vector.shape_cast %6 : vector<16x16x4xf32> to vector<256x4xf32>
    %c0_2 = arith.constant 0 : index
    %c0_3 = arith.constant 0 : index
    %8 = vector.load %arg3[%c0_2, %c0_3] : memref<36x8xf32, #tpu.memory_space<vmem>>, vector<4x8xf32>
    %cst_4 = arith.constant dense<0.000000e+00> : vector<256x8xf32>
    %9 = tpu.matmul %7, %8, %cst_4 {dimension_numbers = #tpu.dot_dimension_numbers<[1], [0], [0], [1], [0, 0, 1, 1], [], []>} : vector<256x4xf32>, vector<4x8xf32>, vector<256x8xf32> -> vector<256x8xf32>
    %10 = arith.addf %2, %9 : vector<256x8xf32>
    %c0_5 = arith.constant 0 : index
    %11 = arith.index_cast %3 : i32 to index
    %c1 = arith.constant 1 : index
    %c0_6 = arith.constant 0 : index
    %12 = vector.load %arg2[%c0_5, %11, %c1, %c0_6] : memref<1x18x18x4xf32, #tpu.memory_space<vmem>>, vector<1x16x16x4xf32>
    %13 = vector.shape_cast %12 : vector<1x16x16x4xf32> to vector<16x16x4xf32>
    %14 = vector.shape_cast %13 : vector<16x16x4xf32> to vector<256x4xf32>
    %c4 = arith.constant 4 : index
    %c0_7 = arith.constant 0 : index
    %15 = vector.load %arg3[%c4, %c0_7] : memref<36x8xf32, #tpu.memory_space<vmem>>, vector<4x8xf32>
    %cst_8 = arith.constant dense<0.000000e+00> : vector<256x8xf32>
    %16 = tpu.matmul %14, %15, %cst_8 {dimension_numbers = #tpu.dot_dimension_numbers<[1], [0], [0], [1], [0, 0, 1, 1], [], []>} : vector<256x4xf32>, vector<4x8xf32>, vector<256x8xf32> -> vector<256x8xf32>
    %17 = arith.addf %10, %16 : vector<256x8xf32>
    %c0_9 = arith.constant 0 : index
    %18 = arith.index_cast %3 : i32 to index
    %c2 = arith.constant 2 : index
    %c0_10 = arith.constant 0 : index
    %19 = vector.load %arg2[%c0_9, %18, %c2, %c0_10] : memref<1x18x18x4xf32, #tpu.memory_space<vmem>>, vector<1x16x16x4xf32>
    %20 = vector.shape_cast %19 : vector<1x16x16x4xf32> to vector<16x16x4xf32>
    %21 = vector.shape_cast %20 : vector<16x16x4xf32> to vector<256x4xf32>
    %c8 = arith.constant 8 : index
    %c0_11 = arith.constant 0 : index
    %22 = vector.load %arg3[%c8, %c0_11] : memref<36x8xf32, #tpu.memory_space<vmem>>, vector<4x8xf32>
    %cst_12 = arith.constant dense<0.000000e+00> : vector<256x8xf32>
    %23 = tpu.matmul %21, %22, %cst_12 {dimension_numbers = #tpu.dot_dimension_numbers<[1], [0], [0], [1], [0, 0, 1, 1], [], []>} : vector<256x4xf32>, vector<4x8xf32>, vector<256x8xf32> -> vector<256x8xf32>
    %24 = arith.addf %17, %23 : vector<256x8xf32>
    %c1_i32 = arith.constant 1 : i32
    %25 = arith.addi %1, %c1_i32 : i32
    %c0_13 = arith.constant 0 : index
    %26 = arith.index_cast %25 : i32 to index
    %c0_14 = arith.constant 0 : index
    %c0_15 = arith.constant 0 : index
    %27 = vector.load %arg2[%c0_13, %26, %c0_14, %c0_15] : memref<1x18x18x4xf32, #tpu.memory_space<vmem>>, vector<1x16x16x4xf32>
    %28 = vector.shape_cast %27 : vector<1x16x16x4xf32> to vector<16x16x4xf32>
    %29 = vector.shape_cast %28 : vector<16x16x4xf32> to vector<256x4xf32>
    %c12 = arith.constant 12 : index
    %c0_16 = arith.constant 0 : index
    %30 = vector.load %arg3[%c12, %c0_16] : memref<36x8xf32, #tpu.memory_space<vmem>>, vector<4x8xf32>
    %cst_17 = arith.constant dense<0.000000e+00> : vector<256x8xf32>
    %31 = tpu.matmul %29, %30, %cst_17 {dimension_numbers = #tpu.dot_dimension_numbers<[1], [0], [0], [1], [0, 0, 1, 1], [], []>} : vector<256x4xf32>, vector<4x8xf32>, vector<256x8xf32> -> vector<256x8xf32>
    %32 = arith.addf %24, %31 : vector<256x8xf32>
    %c0_18 = arith.constant 0 : index
    %33 = arith.index_cast %25 : i32 to index
    %c1_19 = arith.constant 1 : index
    %c0_20 = arith.constant 0 : index
    %34 = vector.load %arg2[%c0_18, %33, %c1_19, %c0_20] : memref<1x18x18x4xf32, #tpu.memory_space<vmem>>, vector<1x16x16x4xf32>
    %35 = vector.shape_cast %34 : vector<1x16x16x4xf32> to vector<16x16x4xf32>
    %36 = vector.shape_cast %35 : vector<16x16x4xf32> to vector<256x4xf32>
    %c16 = arith.constant 16 : index
    %c0_21 = arith.constant 0 : index
    %37 = vector.load %arg3[%c16, %c0_21] : memref<36x8xf32, #tpu.memory_space<vmem>>, vector<4x8xf32>
    %cst_22 = arith.constant dense<0.000000e+00> : vector<256x8xf32>
    %38 = tpu.matmul %36, %37, %cst_22 {dimension_numbers = #tpu.dot_dimension_numbers<[1], [0], [0], [1], [0, 0, 1, 1], [], []>} : vector<256x4xf32>, vector<4x8xf32>, vector<256x8xf32> -> vector<256x8xf32>
    %39 = arith.addf %32, %38 : vector<256x8xf32>
    %c0_23 = arith.constant 0 : index
    %40 = arith.index_cast %25 : i32 to index
    %c2_24 = arith.constant 2 : index
    %c0_25 = arith.constant 0 : index
    %41 = vector.load %arg2[%c0_23, %40, %c2_24, %c0_25] : memref<1x18x18x4xf32, #tpu.memory_space<vmem>>, vector<1x16x16x4xf32>
    %42 = vector.shape_cast %41 : vector<1x16x16x4xf32> to vector<16x16x4xf32>
    %43 = vector.shape_cast %42 : vector<16x16x4xf32> to vector<256x4xf32>
    %c20 = arith.constant 20 : index
    %c0_26 = arith.constant 0 : index
    %44 = vector.load %arg3[%c20, %c0_26] : memref<36x8xf32, #tpu.memory_space<vmem>>, vector<4x8xf32>
    %cst_27 = arith.constant dense<0.000000e+00> : vector<256x8xf32>
    %45 = tpu.matmul %43, %44, %cst_27 {dimension_numbers = #tpu.dot_dimension_numbers<[1], [0], [0], [1], [0, 0, 1, 1], [], []>} : vector<256x4xf32>, vector<4x8xf32>, vector<256x8xf32> -> vector<256x8xf32>
    %46 = arith.addf %39, %45 : vector<256x8xf32>
    %c2_i32 = arith.constant 2 : i32
    %47 = arith.addi %1, %c2_i32 : i32
    %c0_28 = arith.constant 0 : index
    %48 = arith.index_cast %47 : i32 to index
    %c0_29 = arith.constant 0 : index
    %c0_30 = arith.constant 0 : index
    %49 = vector.load %arg2[%c0_28, %48, %c0_29, %c0_30] : memref<1x18x18x4xf32, #tpu.memory_space<vmem>>, vector<1x16x16x4xf32>
    %50 = vector.shape_cast %49 : vector<1x16x16x4xf32> to vector<16x16x4xf32>
    %51 = vector.shape_cast %50 : vector<16x16x4xf32> to vector<256x4xf32>
    %c24 = arith.constant 24 : index
    %c0_31 = arith.constant 0 : index
    %52 = vector.load %arg3[%c24, %c0_31] : memref<36x8xf32, #tpu.memory_space<vmem>>, vector<4x8xf32>
    %cst_32 = arith.constant dense<0.000000e+00> : vector<256x8xf32>
    %53 = tpu.matmul %51, %52, %cst_32 {dimension_numbers = #tpu.dot_dimension_numbers<[1], [0], [0], [1], [0, 0, 1, 1], [], []>} : vector<256x4xf32>, vector<4x8xf32>, vector<256x8xf32> -> vector<256x8xf32>
    %54 = arith.addf %46, %53 : vector<256x8xf32>
    %c0_33 = arith.constant 0 : index
    %55 = arith.index_cast %47 : i32 to index
    %c1_34 = arith.constant 1 : index
    %c0_35 = arith.constant 0 : index
    %56 = vector.load %arg2[%c0_33, %55, %c1_34, %c0_35] : memref<1x18x18x4xf32, #tpu.memory_space<vmem>>, vector<1x16x16x4xf32>
    %57 = vector.shape_cast %56 : vector<1x16x16x4xf32> to vector<16x16x4xf32>
    %58 = vector.shape_cast %57 : vector<16x16x4xf32> to vector<256x4xf32>
    %c28 = arith.constant 28 : index
    %c0_36 = arith.constant 0 : index
    %59 = vector.load %arg3[%c28, %c0_36] : memref<36x8xf32, #tpu.memory_space<vmem>>, vector<4x8xf32>
    %cst_37 = arith.constant dense<0.000000e+00> : vector<256x8xf32>
    %60 = tpu.matmul %58, %59, %cst_37 {dimension_numbers = #tpu.dot_dimension_numbers<[1], [0], [0], [1], [0, 0, 1, 1], [], []>} : vector<256x4xf32>, vector<4x8xf32>, vector<256x8xf32> -> vector<256x8xf32>
    %61 = arith.addf %54, %60 : vector<256x8xf32>
    %c0_38 = arith.constant 0 : index
    %62 = arith.index_cast %47 : i32 to index
    %c2_39 = arith.constant 2 : index
    %c0_40 = arith.constant 0 : index
    %63 = vector.load %arg2[%c0_38, %62, %c2_39, %c0_40] : memref<1x18x18x4xf32, #tpu.memory_space<vmem>>, vector<1x16x16x4xf32>
    %64 = vector.shape_cast %63 : vector<1x16x16x4xf32> to vector<16x16x4xf32>
    %65 = vector.shape_cast %64 : vector<16x16x4xf32> to vector<256x4xf32>
    %c32 = arith.constant 32 : index
    %c0_41 = arith.constant 0 : index
    %66 = vector.load %arg3[%c32, %c0_41] : memref<36x8xf32, #tpu.memory_space<vmem>>, vector<4x8xf32>
    %cst_42 = arith.constant dense<0.000000e+00> : vector<256x8xf32>
    %67 = tpu.matmul %65, %66, %cst_42 {dimension_numbers = #tpu.dot_dimension_numbers<[1], [0], [0], [1], [0, 0, 1, 1], [], []>} : vector<256x4xf32>, vector<4x8xf32>, vector<256x8xf32> -> vector<256x8xf32>
    %68 = arith.addf %61, %67 : vector<256x8xf32>
    %c0_43 = arith.constant 0 : index
    %c0_44 = arith.constant 0 : index
    %69 = vector.load %arg4[%c0_43, %c0_44] : memref<1x8xf32, #tpu.memory_space<vmem>>, vector<1x8xf32>
    %70 = vector.broadcast %69 : vector<1x8xf32> to vector<256x8xf32>
    %71 = arith.addf %68, %70 : vector<256x8xf32>
    %cst_45 = arith.constant 0.000000e+00 : f32
    %72 = vector.broadcast %cst_45 : f32 to vector<256x8xf32>
    %73 = arith.maximumf %71, %72 : vector<256x8xf32>
    %c0_46 = arith.constant 0 : index
    %c0_47 = arith.constant 0 : index
    %74 = vector.load %arg5[%c0_46, %c0_47] : memref<256x8xf32, #tpu.memory_space<vmem>>, vector<256x8xf32>
    tpu.vector_store %arg5[%c0_46, %c0_47], %73 {strides = array<i32>} : memref<256x8xf32, #tpu.memory_space<vmem>>, vector<256x8xf32>,
    return
  }
  func.func @transform_0(%arg0: i32, %arg1: i32) -> (i32, i32, i32, i32) {
    %c0_i32 = arith.constant 0 : i32
    %c0_i32_0 = arith.constant 0 : i32
    %c0_i32_1 = arith.constant 0 : i32
    %c0_i32_2 = arith.constant 0 : i32
    return %arg0, %c0_i32, %c0_i32_0, %c0_i32_1 : i32, i32, i32, i32
  }
  func.func @transform_1(%arg0: i32, %arg1: i32) -> (i32, i32) {
    %c0_i32 = arith.constant 0 : i32
    %c0_i32_0 = arith.constant 0 : i32
    %c0_i32_1 = arith.constant 0 : i32
    return %c0_i32, %c0_i32_0 : i32, i32
  }
  func.func @transform_2(%arg0: i32, %arg1: i32) -> (i32, i32) {
    %c0_i32 = arith.constant 0 : i32
    %c0_i32_0 = arith.constant 0 : i32
    %c0_i32_1 = arith.constant 0 : i32
    return %c0_i32, %c0_i32_0 : i32, i32
  }
  func.func @transform_3(%arg0: i32, %arg1: i32) -> (i32, i32) {
    %c1_i32 = arith.constant 1 : i32
    %0 = arith.muli %arg0, %c1_i32 : i32
    %1 = arith.addi %0, %arg1 : i32
    %c0_i32 = arith.constant 0 : i32
    %c0_i32_0 = arith.constant 0 : i32
    return %1, %c0_i32 : i32, i32
  }
}

</mosaic_0001>

<bundles_post_ra>
// kernel: tpu_custom_call.1
= control target key start
LH: loop header
LB: loop body
LE: loop exit
PB: predicated region body
PF: predicated region fallthrough
CT: control target
= control target key end

     0   :  { %s5393_s12 = smov 0   ;;  %s5395_s13 = smov 0   ;;  %s6476_s0 = inlined_call_operand.vmem [shape: f32[2,18,18,4], index: 0, kind: input, shape index: {}]   ;;  %s6477_s1 = inlined_call_operand.vmem [shape: f32[36,8], index: 1, kind: input, shape index: {}]   ;;  %s6478_s2 = inlined_call_operand.vmem [shape: f32[1,8], index: 2, kind: input, shape index: {}]   ;;  %s6479_s3 = inlined_call_operand.vmem [shape: f32[512,8], index: 3, kind: output, shape index: {}]  }
   0x1   :  { %s5397_s14 = smov 0  }
   0x2 LB: > { %s25_s15 = sadd.s32 1, %s5367_s13  ;;  %p3823_p0 = scmp.ge.s32.totalorder %s5371_s14, 1  ;;  %s5371_s14 = sphi %s5397_s14, %s13_s14   ;;  %s5367_s13 = sphi %s5395_s13, %s6590_s13   ;;  %s5363_s12 = sphi %s5393_s12, %s6589_s12  }
   0x3   : > { %p27_p1 = scmp.ge.s32.totalorder %s25_s15, 2  ;;  %p151_p2 = scmp.lt.s32.totalorder %s5371_s14, 3 }
   0x5   : > { %s6592_s15 = smov (%p27_p1, %s25_s15), 0  ;;  %p152_p3 = pnand %p3823_p0, %p151_p2 }
   0x7   : > { %155 = sbr.rel (%p152_p3) target bundleno = 527 (0x20f), region = 32 }
   0xe   : > { %v257_v0 = vld [vmem:[%s6477_s1 + $0x4] sm:$0xf]  ;;  %vm355_vm0 = vcmask 1043456   ;;  %v5419_v1 = vld [vmem:[%s6477_s1 + $0x10] sm:$0xf]  ;;  %p176_p4 = scmp.lt.s32.totalorder %s5363_s12, 1 }
   0xf   : > { %4616 = vmatprep.subr.msk.mxu1 %vm355_vm0, %v257_v0  ;;  %4816 = vmatprep.subr.msk.mxu0 %vm355_vm0, %v5419_v1  ;;  %v224_v2 = vld [vmem:[%s6477_s1] sm:$0xf]  ;;  %v2110_v3 = vld [vmem:[%s6477_s1 + $0x14] sm:$0xf]  ;;  %vm258_vm1 = vcmask 31744   ;;  %s3825_s16 = sshll.u32 %s5363_s12, 5 }
  0x10   : > { %4617 = vmatpush3.msk.msra.mxu1 %vm355_vm0, %v257_v0  ;;  %4817 = vmatpush3.msk.msra.mxu0 %vm355_vm0, %v5419_v1  ;;  %s177_s24 = scalar_select %p176_p4, %s5363_s12, 1  ;;  %v2502_v9 = vld [vmem:[%s6477_s1 + $0x18] sm:$0xf]  ;;  %v5459_v10 = vld [vmem:[%s6477_s1 + $0x8] sm:$0xf]  ;;  %vm3708_vm2 = vcmask 64512  }
  0x11   : > { %4666 = vmatprep.subr.msk.mxu1 %vm355_vm0, %v224_v2  ;;  %4866 = vmatprep.subr.msk.mxu0 %vm355_vm0, %v2110_v3  ;;  %v5578_v28 = vld [vmem:[%s6477_s1 + $0x1c] sm:$0xf]  ;;  %v5741_v61 = vld [vmem:[%s6477_s1 + $0xc] sm:$0xf]  ;;  %p183_p5 = scmp.lt.s32.totalorder %s3825_s16, 63 }
  0x12   : > { %s5324_s25 = smul.u32 432, %s177_s24 }
  0x13   : > { %s6594_s16 = smov (!%p183_p5, %s3825_s16), 63 }
  0x14   : > { %s5440_s28 = scalar_lea.vmem %s6476_s0, %s5324_s25  ;;  %s3826_s19 = sshll.u32 %s6594_s16, 3 }
  0x15   : > { %v225_v4 = vld [vmem:[%s5440_s28 + $0x1] sm:$0xff]  ;;  %v3991_v5 = vld [vmem:[%s5440_s28 + $0x19] sm:$0xff]  ;;  %v226_v6 = vld [vmem:[%s5440_s28 + $0x9] sm:$0xff]  ;;  %s6365_s21 = scalar_lea.vmem %s6479_s3, %s3826_s19 }
  0x16   : > { %4618 = vmatprep.mubr.msk.f32.mxu1 %vm258_vm1, %v225_v4  ;;  %4818 = vmatprep.mubr.msk.f32.mxu0 %vm258_vm1, %v3991_v5  ;;  %v3992_v7 = vld [vmem:[%s5440_s28 + $0x21] sm:$0xff]  ;;  %v5449_v8 = vld [vmem:[%s5440_s28 + $0x31] sm:$0xff]  ;;  %v5464_v11 = vld [vmem:[%s5440_s28 + $0x39] sm:$0xff] }
  0x17   : > { %4619 = vmatmul.mubr.msk.f32.vlgmr.msra.gmra.mrb[0].mxu1 %vm258_vm1, %v226_v6  ;;  %4819 = vmatmul.mubr.msk.f32.vlgmr.msra.gmra.mrb[0].mxu0 %vm258_vm1, %v3992_v7  ;;  %v5470_v12 = vld [vmem:[%s5440_s28 + $0x49] sm:$0xff]  ;;  %v5483_v13 = vld [vmem:[%s5440_s28 + $0x51] sm:$0xff]  ;;  %v5486_v14 = vld [vmem:[%s5440_s28 + $0x61] sm:$0xff] }
  0x18   : > { %4667 = vmatpush3.msk.msra.mxu1 %vm355_vm0, %v224_v2  ;;  %4867 = vmatpush3.msk.msra.mxu0 %vm355_vm0, %v2110_v3  ;;  %v5497_v15 = vld [vmem:[%s5440_s28 + $0x69] sm:$0xff]  ;;  %v5500_v16 = vld [vmem:[%s5440_s28 + $0x79] sm:$0xff]  ;;  %v5511_v17 = vld [vmem:[%s5440_s28 + $0x81] sm:$0xff] }
  0x19   : > { %4621 = vmatprep.mubr.msk.f32.mxu1 %vm258_vm1, %v3991_v5  ;;  %4821 = vmatprep.mubr.msk.f32.mxu0 %vm258_vm1, %v5449_v8  ;;  %v5514_v18 = vld [vmem:[%s5440_s28 + $0x91] sm:$0xff]  ;;  %v5525_v19 = vld [vmem:[%s5440_s28 + $0x99] sm:$0xff]  ;;  %v5528_v20 = vld [vmem:[%s5440_s28 + $0xa9] sm:$0xff] }
  0x1a   : > { %4916 = vmatprep.subr.msk.mxu0 %vm355_vm0, %v2502_v9  ;;  %4716 = vmatprep.subr.msk.mxu1 %vm355_vm0, %v5459_v10  ;;  %v5539_v21 = vld [vmem:[%s5440_s28 + $0xb1] sm:$0xff]  ;;  %v5542_v22 = vld [vmem:[%s5440_s28 + $0xc1] sm:$0xff]  ;;  %v5553_v23 = vld [vmem:[%s5440_s28 + $0xc9] sm:$0xff] }
  0x1b   : > { %4622 = vmatmul.mubr.msk.f32.gmra.mrb[2].mxu1 %vm258_vm1, %v3992_v7  ;;  %4822 = vmatmul.mubr.msk.f32.gmra.mrb[2].mxu0 %vm258_vm1, %v5464_v11  ;;  %v5556_v24 = vld [vmem:[%s5440_s28 + $0x1a] sm:$0xff]  ;;  %v5567_v25 = vld [vmem:[%s5440_s28 + $0x22] sm:$0xff]  ;;  %v5573_v27 = vld [vmem:[%s5440_s28 + $0x32] sm:$0xff] }
  0x1c   : > { %4624 = vmatprep.mubr.msk.f32.mxu1 %vm258_vm1, %v5449_v8  ;;  %4824 = vmatprep.mubr.msk.f32.mxu0 %vm258_vm1, %v5470_v12  ;;  %v5570_v26 = vld [vmem:[%s5440_s28 + $0xd9] sm:$0xff]  ;;  %v5588_v29 = vld [vmem:[%s5440_s28 + $0xe1] sm:$0xff]  ;;  %v5596_v31 = vld [vmem:[%s5440_s28 + $0xf1] sm:$0xff] }
  0x1d   : > { %6525 = vst [vmem:[#allocation2_spill] sm:$0xff] %v5588_v29  ;;  %v5591_v30 = vld [vmem:[%s5440_s28 + $0x3a] sm:$0xff]  ;;  %6526 = vst [vmem:[#allocation3_spill] sm:$0xff] %v5596_v31  ;;  %v5599_v32 = vld [vmem:[%s5440_s28 + $0x4a] sm:$0xff] }
  0x1e   : > { %v5612_v33 = vld [vmem:[%s5440_s28 + $0xf9] sm:$0xff]  ;;  %v5618_v35 = vld [vmem:[%s5440_s28 + $0x109] sm:$0xff]  ;;  %v5632_v37 = vld [vmem:[%s5440_s28 + $0x111] sm:$0xff] }
  0x1f   : > { %4625 = vmatmul.mubr.msk.f32.gmra.mrb[4].mxu1 %vm258_vm1, %v5464_v11  ;;  %4825 = vmatmul.mubr.msk.f32.gmra.mrb[4].mxu0 %vm258_vm1, %v5483_v13  ;;  %6527 = vst [vmem:[#allocation4_spill] sm:$0xff] %v5612_v33  ;;  %v5615_v34 = vld [vmem:[%s5440_s28 + $0x52] sm:$0xff]  ;;  %6528 = vst [vmem:[#allocation5_spill] sm:$0xff] %v5618_v35  ;;  %v5621_v36 = vld [vmem:[%s5440_s28 + $0x62] sm:$0xff] }
  0x20   : > { %4627 = vmatprep.mubr.msk.f32.mxu1 %vm258_vm1, %v5470_v12  ;;  %4827 = vmatprep.mubr.msk.f32.mxu0 %vm258_vm1, %v5486_v14  ;;  %6529 = vst [vmem:[#allocation6_spill] sm:$0xff] %v5632_v37  ;;  %v5635_v38 = vld [vmem:[%s5440_s28 + $0x6a] sm:$0xff]  ;;  %v5638_v39 = vld [vmem:[%s5440_s28 + $0x121] sm:$0xff]  ;;  %v5658_v43 = vld [vmem:[%s5440_s28 + $0x139] sm:$0xff] }
  0x21   : > { %6530 = vst [vmem:[#allocation7_spill] sm:$0xff] %v5638_v39  ;;  %v5641_v40 = vld [vmem:[%s5440_s28 + $0x7a] sm:$0xff]  ;;  %v5652_v41 = vld [vmem:[%s5440_s28 + $0x129] sm:$0xff]  ;;  %6532 = vst [vmem:[#allocation9_spill] sm:$0xff] %v5658_v43 }
  0x22   : > { %6531 = vst [vmem:[#allocation8_spill] sm:$0xff] %v5652_v41  ;;  %v5655_v42 = vld [vmem:[%s5440_s28 + $0x82] sm:$0xff]  ;;  %v5661_v44 = vld [vmem:[%s5440_s28 + $0x92] sm:$0xff]  ;;  %v5675_v46 = vld [vmem:[%s5440_s28 + $0x9a] sm:$0xff] }
  0x23   : > { %4628 = vmatmul.mubr.msk.f32.gmra.mrb[6].mxu1 %vm258_vm1, %v5483_v13  ;;  %4828 = vmatmul.mubr.msk.f32.gmra.mrb[6].mxu0 %vm258_vm1, %v5497_v15  ;;  %v5672_v45 = vld [vmem:[%s5440_s28 + $0x141] sm:$0xff]  ;;  %v5678_v47 = vld [vmem:[%s5440_s28 + $0x151] sm:$0xff]  ;;  %v5692_v49 = vld [vmem:[%s5440_s28 + $0x159] sm:$0xff] }
  0x24   : > { %4630 = vmatprep.mubr.msk.f32.mxu1 %vm258_vm1, %v5486_v14  ;;  %4830 = vmatprep.mubr.msk.f32.mxu0 %vm258_vm1, %v5500_v16  ;;  %6533 = vst [vmem:[#allocation10_spill] sm:$0xff] %v5672_v45  ;;  %6534 = vst [vmem:[#allocation11_spill] sm:$0xff] %v5678_v47  ;;  %v5681_v48 = vld [vmem:[%s5440_s28 + $0xaa] sm:$0xff]  ;;  %v5695_v50 = vld [vmem:[%s5440_s28 + $0xb2] sm:$0xff] }
  0x25   : > { %6535 = vst [vmem:[#allocation12_spill] sm:$0xff] %v5692_v49  ;;  %v5698_v51 = vld [vmem:[%s5440_s28 + $0x169] sm:$0xff]  ;;  %v5712_v53 = vld [vmem:[%s5440_s28 + $0x171] sm:$0xff]  ;;  %v192_v55 = vld [vmem:[%s5440_s28] sm:$0xff] }
  0x26   : > { %6536 = vst [vmem:[#allocation13_spill] sm:$0xff] %v5698_v51  ;;  %v5701_v52 = vld [vmem:[%s5440_s28 + $0xc2] sm:$0xff]  ;;  %6537 = vst [vmem:[#allocation14_spill] sm:$0xff] %v5712_v53  ;;  %v5715_v54 = vld [vmem:[%s5440_s28 + $0xca] sm:$0xff] }
  0x27   : > { %4631 = vmatmul.mubr.msk.f32.gmra.mrb[8].mxu1 %vm258_vm1, %v5497_v15  ;;  %4831 = vmatmul.mubr.msk.f32.gmra.mrb[8].mxu0 %vm258_vm1, %v5511_v17  ;;  %v5719_v56 = vld [vmem:[%s5440_s28 + $0xda] sm:$0xff]  ;;  %v193_v57 = vld [vmem:[%s5440_s28 + $0x8] sm:$0xff]  ;;  %v5736_v60 = vld [vmem:[%s5440_s28 + $0xf2] sm:$0xff] }
  0x28   : > { %4633 = vmatprep.mubr.msk.f32.mxu1 %vm258_vm1, %v5500_v16  ;;  %4833 = vmatprep.mubr.msk.f32.mxu0 %vm258_vm1, %v5514_v18  ;;  %v5730_v58 = vld [vmem:[%s5440_s28 + $0xe2] sm:$0xff]  ;;  %v5733_v59 = vld [vmem:[%s5440_s28 + $0x18] sm:$0xff]  ;;  %v5759_v0 = vld [vmem:[%s5440_s28 + $0x30] sm:$0xff] }
  0x29   : > { %6538 = vst [vmem:[#allocation15_spill] sm:$0xff] %v5733_v59  ;;  %v5751_v62 = vld [vmem:[%s5440_s28 + $0x20] sm:$0xff]  ;;  %6540 = vst [vmem:[#allocation17_spill] sm:$0xff] %v5759_v0  ;;  %v5762_v2 = vld [vmem:[%s5440_s28 + $0x10a] sm:$0xff] }
  0x2a   : > { %6539 = vst [vmem:[#allocation16_spill] sm:$0xff] %v5751_v62  ;;  %v5754_v63 = vld [vmem:[%s5440_s28 + $0xfa] sm:$0xff]  ;;  %v5778_v4 = vld [vmem:[%s5440_s28 + $0x112] sm:$0xff]  ;;  %v5781_v5 = vld [vmem:[%s5440_s28 + $0x48] sm:$0xff] }
  0x2b   : > { %4634 = vmatmul.mubr.msk.f32.gmra.mrb[10].mxu1 %vm258_vm1, %v5511_v17  ;;  %4834 = vmatmul.mubr.msk.f32.gmra.mrb[10].mxu0 %vm258_vm1, %v5525_v19  ;;  %v5775_v3 = vld [vmem:[%s5440_s28 + $0x38] sm:$0xff]  ;;  %6542 = vst [vmem:[#allocation19_spill] sm:$0xff] %v5781_v5  ;;  %v5784_v6 = vld [vmem:[%s5440_s28 + $0x122] sm:$0xff]  ;;  %v5795_v7 = vld [vmem:[%s5440_s28 + $0x50] sm:$0xff] }
  0x2c   : > { %4636 = vmatprep.mubr.msk.f32.mxu1 %vm258_vm1, %v5514_v18  ;;  %4836 = vmatprep.mubr.msk.f32.mxu0 %vm258_vm1, %v5528_v20  ;;  %6541 = vst [vmem:[#allocation18_spill] sm:$0xff] %v5775_v3  ;;  %6543 = vst [vmem:[#allocation20_spill] sm:$0xff] %v5795_v7 }
  0x2f   : > { %4637 = vmatmul.mubr.msk.f32.gmra.mrb[12].mxu1 %vm258_vm1, %v5525_v19  ;;  %4837 = vmatmul.mubr.msk.f32.gmra.mrb[12].mxu0 %vm258_vm1, %v5539_v21 }
  0x30   : > { %4639 = vmatprep.mubr.msk.f32.mxu1 %vm258_vm1, %v5528_v20  ;;  %4839 = vmatprep.mubr.msk.f32.mxu0 %vm258_vm1, %v5542_v22 }
  0x33   : > { %4640 = vmatmul.mubr.msk.f32.gmra.mrb[14].mxu1 %vm258_vm1, %v5539_v21  ;;  %4840 = vmatmul.mubr.msk.f32.gmra.mrb[14].mxu0 %vm258_vm1, %v5553_v23 }
  0x34   : > { %4642 = vmatprep.mubr.msk.f32.mxu1 %vm258_vm1, %v5542_v22  ;;  %4868 = vmatprep.mubr.msk.f32.mxu0 %vm258_vm1, %v5556_v24 }
  0x37   : > { %4643 = vmatmul.mubr.msk.f32.gmra.mrb[16].mxu1 %vm258_vm1, %v5553_v23  ;;  %4869 = vmatmul.mubr.msk.f32.vlgmr.msra.gmra.mrb[0].mxu0 %vm258_vm1, %v5567_v25 }
  0x38   : > { %4917 = vmatpush3.msk.msra.mxu0 %vm355_vm0, %v2502_v9  ;;  %4645 = vmatprep.mubr.msk.f32.mxu1 %vm258_vm1, %v5570_v26  ;;  %v5798_v9 = vld [vmem:[%s5440_s28 + $0x12a] sm:$0xff] }
  0x39   : > { %4871 = vmatprep.mubr.msk.f32.mxu0 %vm258_vm1, %v5573_v27  ;;  %4966 = vmatprep.subr.msk.mxu0 %vm355_vm0, %v5578_v28 }
  0x3b   : > { %4646 = vmatmul.mubr.msk.f32.gmra.mrb[18].mxu1 %vm258_vm1, %v5588_v29  ;;  %4872 = vmatmul.mubr.msk.f32.gmra.mrb[2].mxu0 %vm258_vm1, %v5591_v30  ;;  %v5895_v29 = vld [vmem:[%s5440_s28 + $0xd8] sm:$0xff] }
  0x3c   : > { %4648 = vmatprep.mubr.msk.f32.mxu1 %vm258_vm1, %v5596_v31  ;;  %4874 = vmatprep.mubr.msk.f32.mxu0 %vm258_vm1, %v5599_v32  ;;  %v5878_v31 = vld [vmem:[%s5440_s28 + $0x18a] sm:$0xff] }
  0x3d   : > { %6554 = vst [vmem:[#allocation31_spill] sm:$0xff] %v5878_v31 }
  0x3f   : > { %4649 = vmatmul.mubr.msk.f32.gmra.mrb[20].mxu1 %vm258_vm1, %v5612_v33  ;;  %4875 = vmatmul.mubr.msk.f32.gmra.mrb[4].mxu0 %vm258_vm1, %v5615_v34  ;;  %v5864_v33 = vld [vmem:[%s5440_s28 + $0x182] sm:$0xff] }
  0x40   : > { %4651 = vmatprep.mubr.msk.f32.mxu1 %vm258_vm1, %v5618_v35  ;;  %4877 = vmatprep.mubr.msk.f32.mxu0 %vm258_vm1, %v5621_v36  ;;  %v5861_v35 = vld [vmem:[%s5440_s28 + $0xa8] sm:$0xff]  ;;  %6552 = vst [vmem:[#allocation29_spill] sm:$0xff] %v5864_v33 }
  0x41   : > { %6551 = vst [vmem:[#allocation28_spill] sm:$0xff] %v5861_v35 }
  0x43   : > { %4652 = vmatmul.mubr.msk.f32.gmra.mrb[22].mxu1 %vm258_vm1, %v5632_v37  ;;  %4878 = vmatmul.mubr.msk.f32.gmra.mrb[6].mxu0 %vm258_vm1, %v5635_v38  ;;  %v5858_v37 = vld [vmem:[%s5440_s28 + $0x172] sm:$0xff] }
  0x44   : > { %4654 = vmatprep.mubr.msk.f32.mxu1 %vm258_vm1, %v5638_v39  ;;  %4880 = vmatprep.mubr.msk.f32.mxu0 %vm258_vm1, %v5641_v40  ;;  %v5855_v39 = vld [vmem:[%s5440_s28 + $0x98] sm:$0xff]  ;;  %6550 = vst [vmem:[#allocation27_spill] sm:$0xff] %v5858_v37 }
  0x45   : > { %6549 = vst [vmem:[#allocation26_spill] sm:$0xff] %v5855_v39 }
  0x47   : > { %4655 = vmatmul.mubr.msk.f32.gmra.mrb[24].mxu1 %vm258_vm1, %v5652_v41  ;;  %4881 = vmatmul.mubr.msk.f32.gmra.mrb[8].mxu0 %vm258_vm1, %v5655_v42  ;;  %v5844_v41 = vld [vmem:[%s5440_s28 + $0x16a] sm:$0xff] }
  0x48   : > { %4657 = vmatprep.mubr.msk.f32.mxu1 %vm258_vm1, %v5658_v43  ;;  %4883 = vmatprep.mubr.msk.f32.mxu0 %vm258_vm1, %v5661_v44  ;;  %v5841_v43 = vld [vmem:[%s5440_s28 + $0x90] sm:$0xff] }
  0x49   : > { %6548 = vst [vmem:[#allocation25_spill] sm:$0xff] %v5841_v43 }
  0x4b   : > { %4658 = vmatmul.mubr.msk.f32.gmra.mrb[26].mxu1 %vm258_vm1, %v5672_v45  ;;  %4884 = vmatmul.mubr.msk.f32.gmra.mrb[10].mxu0 %vm258_vm1, %v5675_v46  ;;  %v5838_v45 = vld [vmem:[%s5440_s28 + $0x15a] sm:$0xff] }
  0x4c   : > { %4660 = vmatprep.mubr.msk.f32.mxu1 %vm258_vm1, %v5678_v47  ;;  %4886 = vmatprep.mubr.msk.f32.mxu0 %vm258_vm1, %v5681_v48  ;;  %v5835_v47 = vld [vmem:[%s5440_s28 + $0x80] sm:$0xff] }
  0x4d   : > { %6547 = vst [vmem:[#allocation24_spill] sm:$0xff] %v5835_v47 }
  0x4f   : > { %4661 = vmatmul.mubr.msk.f32.gmra.mrb[28].mxu1 %vm258_vm1, %v5692_v49  ;;  %4887 = vmatmul.mubr.msk.f32.gmra.mrb[12].mxu0 %vm258_vm1, %v5695_v50  ;;  %v5824_v49 = vld [vmem:[%s5440_s28 + $0x152] sm:$0xff] }
  0x50   : > { %4663 = vmatprep.mubr.msk.f32.mxu1 %vm258_vm1, %v5698_v51  ;;  %4889 = vmatprep.mubr.msk.f32.mxu0 %vm258_vm1, %v5701_v52  ;;  %v5821_v51 = vld [vmem:[%s5440_s28 + $0x78] sm:$0xff] }
  0x51   : > { %6546 = vst [vmem:[#allocation23_spill] sm:$0xff] %v5821_v51 }
  0x53   : > { %4664 = vmatmul.mubr.msk.f32.gmra.mrb[30].mxu1 %vm258_vm1, %v5712_v53  ;;  %4890 = vmatmul.mubr.msk.f32.gmra.mrb[14].mxu0 %vm258_vm1, %v5715_v54  ;;  %v5818_v53 = vld [vmem:[%s5440_s28 + $0x142] sm:$0xff] }
  0x54   : > { %4668 = vmatprep.mubr.msk.f32.mxu1 %vm258_vm1, %v192_v55  ;;  %4892 = vmatprep.mubr.msk.f32.mxu0 %vm258_vm1, %v5719_v56  ;;  %v5804_v55 = vld [vmem:[%s5440_s28 + $0x13a] sm:$0xff] }
  0x57   : > { %4669 = vmatmul.mubr.msk.f32.vlgmr.msra.gmra.mrb[0].mxu1 %vm258_vm1, %v193_v57  ;;  %4893 = vmatmul.mubr.msk.f32.gmra.mrb[16].mxu0 %vm258_vm1, %v5730_v58  ;;  %v5815_v57 = vld [vmem:[%s5440_s28 + $0x68] sm:$0xff] }
  0x58   : > { %4717 = vmatpush3.msk.msra.mxu1 %vm355_vm0, %v5459_v10  ;;  %4671 = vmatprep.mubr.msk.f32.mxu1 %vm258_vm1, %v5733_v59  ;;  %v5801_v10 = vld [vmem:[%s5440_s28 + $0x60] sm:$0xff]  ;;  %6545 = vst [vmem:[#allocation22_spill] sm:$0xff] %v5815_v57 }
  0x59   : > { %4895 = vmatprep.mubr.msk.f32.mxu0 %vm258_vm1, %v5736_v60  ;;  %4766 = vmatprep.subr.msk.mxu1 %vm355_vm0, %v5741_v61  ;;  %6544 = vst [vmem:[#allocation21_spill] sm:$0xff] %v5801_v10  ;;  %v5881_v59 = vld [vmem:[%s5440_s28 + $0xc0] sm:$0xff] }
  0x5b   : > { %4672 = vmatmul.mubr.msk.f32.gmra.mrb[2].mxu1 %vm258_vm1, %v5751_v62  ;;  %4896 = vmatmul.mubr.msk.f32.gmra.mrb[18].mxu0 %vm258_vm1, %v5754_v63  ;;  %v5875_v62 = vld [vmem:[%s5440_s28 + $0xb0] sm:$0xff] }
  0x5c   : > { %4674 = vmatprep.mubr.msk.f32.mxu1 %vm258_vm1, %v5759_v0  ;;  %4898 = vmatprep.mubr.msk.f32.mxu0 %vm258_vm1, %v5762_v2  ;;  %6553 = vst [vmem:[#allocation30_spill] sm:$0xff] %v5875_v62 }
  0x5f   : > { %4675 = vmatmul.mubr.msk.f32.gmra.mrb[4].mxu1 %vm258_vm1, %v5775_v3  ;;  %4899 = vmatmul.mubr.msk.f32.gmra.mrb[20].mxu0 %vm258_vm1, %v5778_v4 }
  0x60   : > { %4677 = vmatprep.mubr.msk.f32.mxu1 %vm258_vm1, %v5781_v5  ;;  %4901 = vmatprep.mubr.msk.f32.mxu0 %vm258_vm1, %v5784_v6 }
  0x63   : > { %4678 = vmatmul.mubr.msk.f32.gmra.mrb[6].mxu1 %vm258_vm1, %v5795_v7  ;;  %4902 = vmatmul.mubr.msk.f32.gmra.mrb[22].mxu0 %vm258_vm1, %v5798_v9 }
  0x64   : > { %4680 = vmatprep.mubr.msk.f32.mxu1 %vm258_vm1, %v5801_v10  ;;  %4904 = vmatprep.mubr.msk.f32.mxu0 %vm258_vm1, %v5804_v55 }
  0x67   : > { %4681 = vmatmul.mubr.msk.f32.gmra.mrb[8].mxu1 %vm258_vm1, %v5815_v57  ;;  %4905 = vmatmul.mubr.msk.f32.gmra.mrb[24].mxu0 %vm258_vm1, %v5818_v53 }
  0x68   : > { %4683 = vmatprep.mubr.msk.f32.mxu1 %vm258_vm1, %v5821_v51  ;;  %4907 = vmatprep.mubr.msk.f32.mxu0 %vm258_vm1, %v5824_v49 }
  0x6b   : > { %4684 = vmatmul.mubr.msk.f32.gmra.mrb[10].mxu1 %vm258_vm1, %v5835_v47  ;;  %4908 = vmatmul.mubr.msk.f32.gmra.mrb[26].mxu0 %vm258_vm1, %v5838_v45 }
  0x6c   : > { %4686 = vmatprep.mubr.msk.f32.mxu1 %vm258_vm1, %v5841_v43  ;;  %4910 = vmatprep.mubr.msk.f32.mxu0 %vm258_vm1, %v5844_v41 }
  0x6f   : > { %4687 = vmatmul.mubr.msk.f32.gmra.mrb[12].mxu1 %vm258_vm1, %v5855_v39  ;;  %4911 = vmatmul.mubr.msk.f32.gmra.mrb[28].mxu0 %vm258_vm1, %v5858_v37  ;;  %v5900_v37 = vld [vmem:[%s6477_s1 + $0x20] sm:$0xf] }
  0x70   : > { %4689 = vmatprep.mubr.msk.f32.mxu1 %vm258_vm1, %v5861_v35  ;;  %4913 = vmatprep.mubr.msk.f32.mxu0 %vm258_vm1, %v5864_v33  ;;  %v5892_v33 = vld [vmem:[%s5440_s28 + $0xc8] sm:$0xff] }
  0x71   : > { %6555 = vst [vmem:[#allocation32_spill] sm:$0xff] %v5892_v33 }
  0x73   : > { %4690 = vmatmul.mubr.msk.f32.gmra.mrb[14].mxu1 %vm258_vm1, %v5875_v62  ;;  %4914 = vmatmul.mubr.msk.f32.gmra.mrb[30].mxu0 %vm258_vm1, %v5878_v31  ;;  %v5911_v31 = vld [vmem:[%s5440_s28 + $0xe0] sm:$0xff] }
  0x74   : > { %4692 = vmatprep.mubr.msk.f32.mxu1 %vm258_vm1, %v5881_v59  ;;  %4918 = vmatprep.mubr.msk.f32.mxu0 %vm258_vm1, %v5759_v0  ;;  %v5916_v0 = vld [vmem:[%s5440_s28 + $0xf0] sm:$0xff] }
  0x77   : > { %4693 = vmatmul.mubr.msk.f32.gmra.mrb[16].mxu1 %vm258_vm1, %v5892_v33  ;;  %4919 = vmatmul.mubr.msk.f32.vlgmr.msra.gmra.mrb[0].mxu0 %vm258_vm1, %v5775_v3  ;;  %v908_v3 = vld [vmem:[%s5440_s28 + $0x2] sm:$0xff] }
  0x78   : > { %4967 = vmatpush3.msk.msra.mxu0 %vm355_vm0, %v5578_v28  ;;  %4695 = vmatprep.mubr.msk.f32.mxu1 %vm258_vm1, %v5895_v29  ;;  %v5929_v28 = vld [vmem:[%s5440_s28 + $0xf8] sm:$0xff] }
  0x79   : > { %4921 = vmatprep.mubr.msk.f32.mxu0 %vm258_vm1, %v5781_v5  ;;  %5016 = vmatprep.subr.msk.mxu0 %vm355_vm0, %v5900_v37  ;;  %v5932_v5 = vld [vmem:[%s5440_s28 + $0x108] sm:$0xff] }
  0x7b   : > { %4696 = vmatmul.mubr.msk.f32.gmra.mrb[18].mxu1 %vm258_vm1, %v5911_v31  ;;  %4922 = vmatmul.mubr.msk.f32.gmra.mrb[2].mxu0 %vm258_vm1, %v5795_v7  ;;  %v5943_v7 = vld [vmem:[%s5440_s28 + $0x110] sm:$0xff] }
  0x7c   : > { %4698 = vmatprep.mubr.msk.f32.mxu1 %vm258_vm1, %v5916_v0  ;;  %4924 = vmatprep.mubr.msk.f32.mxu0 %vm258_vm1, %v5801_v10  ;;  %v5946_v10 = vld [vmem:[%s5440_s28 + $0x120] sm:$0xff] }
  0x7f   : > { %4699 = vmatmul.mubr.msk.f32.gmra.mrb[20].mxu1 %vm258_vm1, %v5929_v28  ;;  %4925 = vmatmul.mubr.msk.f32.gmra.mrb[4].mxu0 %vm258_vm1, %v5815_v57  ;;  %v5957_v57 = vld [vmem:[%s5440_s28 + $0x128] sm:$0xff] }
  0x80   : > { %4701 = vmatprep.mubr.msk.f32.mxu1 %vm258_vm1, %v5932_v5  ;;  %4927 = vmatprep.mubr.msk.f32.mxu0 %vm258_vm1, %v5821_v51  ;;  %v5960_v51 = vld [vmem:[%s5440_s28 + $0x138] sm:$0xff] }
  0x83   : > { %4702 = vmatmul.mubr.msk.f32.gmra.mrb[22].mxu1 %vm258_vm1, %v5943_v7  ;;  %4928 = vmatmul.mubr.msk.f32.gmra.mrb[6].mxu0 %vm258_vm1, %v5835_v47  ;;  %v5971_v47 = vld [vmem:[%s5440_s28 + $0x140] sm:$0xff] }
  0x84   : > { %4704 = vmatprep.mubr.msk.f32.mxu1 %vm258_vm1, %v5946_v10  ;;  %4930 = vmatprep.mubr.msk.f32.mxu0 %vm258_vm1, %v5841_v43  ;;  %v5974_v43 = vld [vmem:[%s5440_s28 + $0x150] sm:$0xff] }
  0x87   : > { %4705 = vmatmul.mubr.msk.f32.gmra.mrb[24].mxu1 %vm258_vm1, %v5957_v57  ;;  %4931 = vmatmul.mubr.msk.f32.gmra.mrb[8].mxu0 %vm258_vm1, %v5855_v39  ;;  %v5985_v39 = vld [vmem:[%s5440_s28 + $0x158] sm:$0xff] }
  0x88   : > { %4707 = vmatprep.mubr.msk.f32.mxu1 %vm258_vm1, %v5960_v51  ;;  %4933 = vmatprep.mubr.msk.f32.mxu0 %vm258_vm1, %v5861_v35  ;;  %v5988_v35 = vld [vmem:[%s5440_s28 + $0x168] sm:$0xff] }
  0x8b   : > { %4708 = vmatmul.mubr.msk.f32.gmra.mrb[26].mxu1 %vm258_vm1, %v5971_v47  ;;  %4934 = vmatmul.mubr.msk.f32.gmra.mrb[10].mxu0 %vm258_vm1, %v5875_v62  ;;  %v5999_v62 = vld [vmem:[%s5440_s28 + $0x170] sm:$0xff] }
  0x8c   : > { %4710 = vmatprep.mubr.msk.f32.mxu1 %vm258_vm1, %v5974_v43  ;;  %4936 = vmatprep.mubr.msk.f32.mxu0 %vm258_vm1, %v5881_v59 }
  0x8f   : > { %4711 = vmatmul.mubr.msk.f32.gmra.mrb[28].mxu1 %vm258_vm1, %v5985_v39  ;;  %4937 = vmatmul.mubr.msk.f32.gmra.mrb[12].mxu0 %vm258_vm1, %v5892_v33  ;;  %v909_v33 = vld [vmem:[%s5440_s28 + $0xa] sm:$0xff] }
  0x90   : > { %4713 = vmatprep.mubr.msk.f32.mxu1 %vm258_vm1, %v5988_v35  ;;  %4939 = vmatprep.mubr.msk.f32.mxu0 %vm258_vm1, %v5895_v29 }
  0x93   : > { %4714 = vmatmul.mubr.msk.f32.gmra.mrb[30].mxu1 %vm258_vm1, %v5999_v62  ;;  %4940 = vmatmul.mubr.msk.f32.gmra.mrb[14].mxu0 %vm258_vm1, %v5911_v31 }
  0x94   : > { %4718 = vmatprep.mubr.msk.f32.mxu1 %vm258_vm1, %v908_v3  ;;  %4942 = vmatprep.mubr.msk.f32.mxu0 %vm258_vm1, %v5916_v0  ;;  %v6572_v3 = vld [vmem:[#allocation22_spill] sm:$0xff] }
  0x97   : > { %4719 = vmatmul.mubr.msk.f32.vlgmr.msra.gmra.mrb[0].mxu1 %vm258_vm1, %v909_v33  ;;  %4943 = vmatmul.mubr.msk.f32.gmra.mrb[16].mxu0 %vm258_vm1, %v5929_v28  ;;  %v4151_v33 = vld [vmem:[%s5440_s28 + $0x198] sm:$0xff] }
  0x98   : > { %4767 = vmatpush3.msk.msra.mxu1 %vm355_vm0, %v5741_v61  ;;  %4721 = vmatprep.mubr.msk.f32.mxu1 %vm258_vm1, %v5556_v24  ;;  %v6054_v24 = vld [vmem:[%s5440_s28 + $0x180] sm:$0xff] }
  0x99   : > { %4945 = vmatprep.mubr.msk.f32.mxu0 %vm258_vm1, %v5932_v5  ;;  %5066 = vmatprep.subr.msk.mxu1 %vm355_vm0, %v5419_v1  ;;  %v4152_v61 = vld [vmem:[%s5440_s28 + $0x1a0] sm:$0xff] }
  0x9b   : > { %4722 = vmatmul.mubr.msk.f32.gmra.mrb[2].mxu1 %vm258_vm1, %v5567_v25  ;;  %4946 = vmatmul.mubr.msk.f32.gmra.mrb[18].mxu0 %vm258_vm1, %v5943_v7  ;;  %v6065_v25 = vld [vmem:[%s5440_s28 + $0x188] sm:$0xff] }
  0x9c   : > { %4724 = vmatprep.mubr.msk.f32.mxu1 %vm258_vm1, %v5573_v27  ;;  %4948 = vmatprep.mubr.msk.f32.mxu0 %vm258_vm1, %v5946_v10 }
  0x9f   : > { %4725 = vmatmul.mubr.msk.f32.gmra.mrb[4].mxu1 %vm258_vm1, %v5591_v30  ;;  %4949 = vmatmul.mubr.msk.f32.gmra.mrb[20].mxu0 %vm258_vm1, %v5957_v57 }
  0xa0   : > { %4727 = vmatprep.mubr.msk.f32.mxu1 %vm258_vm1, %v5599_v32  ;;  %4951 = vmatprep.mubr.msk.f32.mxu0 %vm258_vm1, %v5960_v51 }
  0xa3   : > { %4728 = vmatmul.mubr.msk.f32.gmra.mrb[6].mxu1 %vm258_vm1, %v5615_v34  ;;  %4952 = vmatmul.mubr.msk.f32.gmra.mrb[22].mxu0 %vm258_vm1, %v5971_v47 }
  0xa4   : > { %4730 = vmatprep.mubr.msk.f32.mxu1 %vm258_vm1, %v5621_v36  ;;  %4954 = vmatprep.mubr.msk.f32.mxu0 %vm258_vm1, %v5974_v43 }
  0xa7   : > { %4731 = vmatmul.mubr.msk.f32.gmra.mrb[8].mxu1 %vm258_vm1, %v5635_v38  ;;  %4955 = vmatmul.mubr.msk.f32.gmra.mrb[24].mxu0 %vm258_vm1, %v5985_v39 }
  0xa8   : > { %4733 = vmatprep.mubr.msk.f32.mxu1 %vm258_vm1, %v5641_v40  ;;  %4957 = vmatprep.mubr.msk.f32.mxu0 %vm258_vm1, %v5988_v35 }
  0xab   : > { %4734 = vmatmul.mubr.msk.f32.gmra.mrb[10].mxu1 %vm258_vm1, %v5655_v42  ;;  %4958 = vmatmul.mubr.msk.f32.gmra.mrb[26].mxu0 %vm258_vm1, %v5999_v62 }
  0xac   : > { %4736 = vmatprep.mubr.msk.f32.mxu1 %vm258_vm1, %v5661_v44  ;;  %4960 = vmatprep.mubr.msk.f32.mxu0 %vm258_vm1, %v6054_v24 }
  0xaf   : > { %4737 = vmatmul.mubr.msk.f32.gmra.mrb[12].mxu1 %vm258_vm1, %v5675_v46  ;;  %4961 = vmatmul.mubr.msk.f32.gmra.mrb[28].mxu0 %vm258_vm1, %v6065_v25 }
  0xb0   : > { %4739 = vmatprep.mubr.msk.f32.mxu1 %vm258_vm1, %v5681_v48  ;;  %4963 = vmatprep.mubr.msk.f32.mxu0 %vm258_vm1, %v4151_v33  ;;  %v6573_v33 = vld [vmem:[#allocation10_spill] sm:$0xff] }
  0xb3   : > { %4740 = vmatmul.mubr.msk.f32.gmra.mrb[14].mxu1 %vm258_vm1, %v5695_v50  ;;  %4964 = vmatmul.mubr.msk.f32.gmra.mrb[30].mxu0 %vm258_vm1, %v4152_v61  ;;  %v6574_v61 = vld [vmem:[#allocation23_spill] sm:$0xff] }
  0xb4   : > { %4742 = vmatprep.mubr.msk.f32.mxu1 %vm258_vm1, %v5701_v52  ;;  %4968 = vmatprep.mubr.msk.f32.mxu0 %vm258_vm1, %v5449_v8  ;;  %v6556_v8 = vld [vmem:[#allocation27_spill] sm:$0xff] }
  0xb7   : > { %4743 = vmatmul.mubr.msk.f32.gmra.mrb[16].mxu1 %vm258_vm1, %v5715_v54  ;;  %4969 = vmatmul.mubr.msk.f32.vlgmr.msra.gmra.mrb[0].mxu0 %vm258_vm1, %v5464_v11  ;;  %v6557_v11 = vld [vmem:[#allocation2_spill] sm:$0xff] }
  0xb8   : > { %5017 = vmatpush3.msk.msra.mxu0 %vm355_vm0, %v5900_v37  ;;  %4745 = vmatprep.mubr.msk.f32.mxu1 %vm258_vm1, %v5719_v56  ;;  %v6571_v37 = vld [vmem:[#allocation9_spill] sm:$0xff] }
  0xb9   : > { %4971 = vmatprep.mubr.msk.f32.mxu0 %vm258_vm1, %v5470_v12  ;;  %v6558_v12 = vld [vmem:[#allocation15_spill] sm:$0xff] }
  0xbb   : > { %4746 = vmatmul.mubr.msk.f32.gmra.mrb[18].mxu1 %vm258_vm1, %v5730_v58  ;;  %4972 = vmatmul.mubr.msk.f32.gmra.mrb[2].mxu0 %vm258_vm1, %v5483_v13  ;;  %v6559_v13 = vld [vmem:[#allocation3_spill] sm:$0xff] }
  0xbc   : > { %4748 = vmatprep.mubr.msk.f32.mxu1 %vm258_vm1, %v5736_v60  ;;  %4974 = vmatprep.mubr.msk.f32.mxu0 %vm258_vm1, %v5486_v14  ;;  %v6560_v14 = vld [vmem:[#allocation16_spill] sm:$0xff] }
  0xbf   : > { %4749 = vmatmul.mubr.msk.f32.gmra.mrb[20].mxu1 %vm258_vm1, %v5754_v63  ;;  %4975 = vmatmul.mubr.msk.f32.gmra.mrb[4].mxu0 %vm258_vm1, %v5497_v15  ;;  %v6561_v15 = vld [vmem:[#allocation4_spill] sm:$0xff] }
  0xc0   : > { %4751 = vmatprep.mubr.msk.f32.mxu1 %vm258_vm1, %v5762_v2  ;;  %4977 = vmatprep.mubr.msk.f32.mxu0 %vm258_vm1, %v5500_v16  ;;  %v6562_v16 = vld [vmem:[#allocation17_spill] sm:$0xff] }
  0xc3   : > { %4752 = vmatmul.mubr.msk.f32.gmra.mrb[22].mxu1 %vm258_vm1, %v5778_v4  ;;  %4978 = vmatmul.mubr.msk.f32.gmra.mrb[6].mxu0 %vm258_vm1, %v5511_v17  ;;  %v6563_v17 = vld [vmem:[#allocation5_spill] sm:$0xff] }
  0xc4   : > { %4754 = vmatprep.mubr.msk.f32.mxu1 %vm258_vm1, %v5784_v6  ;;  %4980 = vmatprep.mubr.msk.f32.mxu0 %vm258_vm1, %v5514_v18  ;;  %v6564_v18 = vld [vmem:[#allocation18_spill] sm:$0xff] }
  0xc7   : > { %4755 = vmatmul.mubr.msk.f32.gmra.mrb[24].mxu1 %vm258_vm1, %v5798_v9  ;;  %4981 = vmatmul.mubr.msk.f32.gmra.mrb[8].mxu0 %vm258_vm1, %v5525_v19  ;;  %v6565_v19 = vld [vmem:[#allocation6_spill] sm:$0xff] }
  0xc8   : > { %4757 = vmatprep.mubr.msk.f32.mxu1 %vm258_vm1, %v5804_v55  ;;  %4983 = vmatprep.mubr.msk.f32.mxu0 %vm258_vm1, %v5528_v20  ;;  %v6566_v20 = vld [vmem:[#allocation19_spill] sm:$0xff] }
  0xcb   : > { %4758 = vmatmul.mubr.msk.f32.gmra.mrb[26].mxu1 %vm258_vm1, %v5818_v53  ;;  %4984 = vmatmul.mubr.msk.f32.gmra.mrb[10].mxu0 %vm258_vm1, %v5539_v21  ;;  %v6567_v21 = vld [vmem:[#allocation7_spill] sm:$0xff] }
  0xcc   : > { %4760 = vmatprep.mubr.msk.f32.mxu1 %vm258_vm1, %v5824_v49  ;;  %4986 = vmatprep.mubr.msk.f32.mxu0 %vm258_vm1, %v5542_v22  ;;  %v6569_v22 = vld [vmem:[#allocation8_spill] sm:$0xff] }
  0xcf   : > { %4761 = vmatmul.mubr.msk.f32.gmra.mrb[28].mxu1 %vm258_vm1, %v5838_v45  ;;  %4987 = vmatmul.mubr.msk.f32.gmra.mrb[12].mxu0 %vm258_vm1, %v5553_v23  ;;  %v6570_v23 = vld [vmem:[#allocation21_spill] sm:$0xff] }
  0xd0   : > { %4763 = vmatprep.mubr.msk.f32.mxu1 %vm258_vm1, %v5844_v41  ;;  %4989 = vmatprep.mubr.msk.f32.mxu0 %vm258_vm1, %v5570_v26 }
  0xd3   : > { %4764 = vmatmul.mubr.msk.f32.gmra.mrb[30].mxu1 %vm258_vm1, %v6556_v8  ;;  %4990 = vmatmul.mubr.msk.f32.gmra.mrb[14].mxu0 %vm258_vm1, %v6557_v11  ;;  %v6583_v8 = vld [vmem:[#allocation30_spill] sm:$0xff] }
  0xd4   : > { %4768 = vmatprep.mubr.msk.f32.mxu1 %vm258_vm1, %v6558_v12  ;;  %4992 = vmatprep.mubr.msk.f32.mxu0 %vm258_vm1, %v6559_v13  ;;  %v6575_v12 = vld [vmem:[#allocation11_spill] sm:$0xff] }
  0xd7   : > { %4769 = vmatmul.mubr.msk.f32.vlgmr.msra.gmra.mrb[0].mxu1 %vm258_vm1, %v6560_v14  ;;  %4993 = vmatmul.mubr.msk.f32.gmra.mrb[16].mxu0 %vm258_vm1, %v6561_v15  ;;  %v6576_v14 = vld [vmem:[#allocation24_spill] sm:$0xff] }
  0xd8   : > { %5067 = vmatpush3.msk.msra.mxu1 %vm355_vm0, %v5419_v1  ;;  %4771 = vmatprep.mubr.msk.f32.mxu1 %vm258_vm1, %v6562_v16  ;;  %v6568_v1 = vld [vmem:[#allocation20_spill] sm:$0xff] }
  0xd9   : > { %4995 = vmatprep.mubr.msk.f32.mxu0 %vm258_vm1, %v6563_v17  ;;  %v6577_v16 = vld [vmem:[#allocation12_spill] sm:$0xff] }
  0xdb   : > { %4772 = vmatmul.mubr.msk.f32.gmra.mrb[2].mxu1 %vm258_vm1, %v6564_v18  ;;  %4996 = vmatmul.mubr.msk.f32.gmra.mrb[18].mxu0 %vm258_vm1, %v6565_v19  ;;  %v6578_v18 = vld [vmem:[#allocation25_spill] sm:$0xff] }
  0xdc   : > { %4774 = vmatprep.mubr.msk.f32.mxu1 %vm258_vm1, %v6566_v20  ;;  %4998 = vmatprep.mubr.msk.f32.mxu0 %vm258_vm1, %v6567_v21  ;;  %v6579_v20 = vld [vmem:[#allocation13_spill] sm:$0xff] }
  0xdf   : > { %4775 = vmatmul.mubr.msk.f32.gmra.mrb[4].mxu1 %vm258_vm1, %v6568_v1  ;;  %4999 = vmatmul.mubr.msk.f32.gmra.mrb[20].mxu0 %vm258_vm1, %v6569_v22  ;;  %v6192_v1 = vld [vmem:[%s5440_s28 + $0x181] sm:$0xff] }
  0xe0   : > { %4777 = vmatprep.mubr.msk.f32.mxu1 %vm258_vm1, %v6570_v23  ;;  %5001 = vmatprep.mubr.msk.f32.mxu0 %vm258_vm1, %v6571_v37  ;;  %v6580_v23 = vld [vmem:[#allocation26_spill] sm:$0xff] }
  0xe3   : > { %4778 = vmatmul.mubr.msk.f32.gmra.mrb[6].mxu1 %vm258_vm1, %v6572_v3  ;;  %5002 = vmatmul.mubr.msk.f32.gmra.mrb[22].mxu0 %vm258_vm1, %v6573_v33  ;;  %v6581_v3 = vld [vmem:[#allocation14_spill] sm:$0xff] }
  0xe4   : > { %4780 = vmatprep.mubr.msk.f32.mxu1 %vm258_vm1, %v6574_v61  ;;  %5004 = vmatprep.mubr.msk.f32.mxu0 %vm258_vm1, %v6575_v12  ;;  %v6582_v61 = vld [vmem:[#allocation28_spill] sm:$0xff] }
  0xe7   : > { %4781 = vmatmul.mubr.msk.f32.gmra.mrb[8].mxu1 %vm258_vm1, %v6576_v14  ;;  %5005 = vmatmul.mubr.msk.f32.gmra.mrb[24].mxu0 %vm258_vm1, %v6577_v16  ;;  %v6203_v14 = vld [vmem:[%s5440_s28 + $0x189] sm:$0xff] }
  0xe8   : > { %4783 = vmatprep.mubr.msk.f32.mxu1 %vm258_vm1, %v6578_v18  ;;  %5007 = vmatprep.mubr.msk.f32.mxu0 %vm258_vm1, %v6579_v20  ;;  %v4216_v18 = vld [vmem:[%s5440_s28 + $0x199] sm:$0xff] }
  0xeb   : > { %4784 = vmatmul.mubr.msk.f32.gmra.mrb[10].mxu1 %vm258_vm1, %v6580_v23  ;;  %5008 = vmatmul.mubr.msk.f32.gmra.mrb[26].mxu0 %vm258_vm1, %v6581_v3  ;;  %v4217_v23 = vld [vmem:[%s5440_s28 + $0x1a1] sm:$0xff]  ;;  %v6584_v3 = vld [vmem:[#allocation32_spill] sm:$0xff] }
  0xec   : > { %4786 = vmatprep.mubr.msk.f32.mxu1 %vm258_vm1, %v6582_v61  ;;  %5010 = vmatprep.mubr.msk.f32.mxu0 %vm258_vm1, %v6192_v1 }
  0xef   : > { %4787 = vmatmul.mubr.msk.f32.gmra.mrb[12].mxu1 %vm258_vm1, %v6583_v8  ;;  %5011 = vmatmul.mubr.msk.f32.gmra.mrb[28].mxu0 %vm258_vm1, %v6203_v14 }
  0xf0   : > { %4789 = vmatprep.mubr.msk.f32.mxu1 %vm258_vm1, %v5881_v59  ;;  %5013 = vmatprep.mubr.msk.f32.mxu0 %vm258_vm1, %v4216_v18 }
  0xf3   : > { %4790 = vmatmul.mubr.msk.f32.gmra.mrb[14].mxu1 %vm258_vm1, %v6584_v3  ;;  %5014 = vmatmul.mubr.msk.f32.gmra.mrb[30].mxu0 %vm258_vm1, %v4217_v23 }
  0xf4   : > { %4792 = vmatprep.mubr.msk.f32.mxu1 %vm258_vm1, %v5895_v29  ;;  %5018 = vmatprep.mubr.msk.f32.mxu0 %vm258_vm1, %v5573_v27  ;;  %v6586_v27 = vld [vmem:[#allocation29_spill] sm:$0xff] }
  0xf5   : > { %v4281_v29 = vld [vmem:[%s5440_s28 + $0x19a] sm:$0xff] }
  0xf7   : > { %4793 = vmatmul.mubr.msk.f32.gmra.mrb[16].mxu1 %vm258_vm1, %v5911_v31  ;;  %5019 = vmatmul.mubr.msk.f32.vlgmr.msra.gmra.mrb[0].mxu0 %vm258_vm1, %v5591_v30  ;;  %v6587_v30 = vld [vmem:[#allocation14_spill] sm:$0xff]  ;;  %v6588_v31 = vld [vmem:[#allocation31_spill] sm:$0xff] }
  0xf8   : > { %4795 = vmatprep.mubr.msk.f32.mxu1 %vm258_vm1, %v5916_v0  ;;  %5021 = vmatprep.mubr.msk.f32.mxu0 %vm258_vm1, %v5599_v32  ;;  %v4282_v32 = vld [vmem:[%s5440_s28 + $0x1a2] sm:$0xff] }
  0xfb   : > { %4796 = vmatmul.mubr.msk.f32.gmra.mrb[18].mxu1 %vm258_vm1, %v5929_v28  ;;  %5022 = vmatmul.mubr.msk.f32.gmra.mrb[2].mxu0 %vm258_vm1, %v5615_v34 }
  0xfc   : > { %4798 = vmatprep.mubr.msk.f32.mxu1 %vm258_vm1, %v5932_v5  ;;  %5024 = vmatprep.mubr.msk.f32.mxu0 %vm258_vm1, %v5621_v36 }
  0xff   : > { %4799 = vmatmul.mubr.msk.f32.gmra.mrb[20].mxu1 %vm258_vm1, %v5943_v7  ;;  %5025 = vmatmul.mubr.msk.f32.gmra.mrb[4].mxu0 %vm258_vm1, %v5635_v38 }
 0x100   : > { %4801 = vmatprep.mubr.msk.f32.mxu1 %vm258_vm1, %v5946_v10  ;;  %5027 = vmatprep.mubr.msk.f32.mxu0 %vm258_vm1, %v5641_v40 }
 0x103   : > { %4802 = vmatmul.mubr.msk.f32.gmra.mrb[22].mxu1 %vm258_vm1, %v5957_v57  ;;  %5028 = vmatmul.mubr.msk.f32.gmra.mrb[6].mxu0 %vm258_vm1, %v5655_v42 }
 0x104   : > { %4804 = vmatprep.mubr.msk.f32.mxu1 %vm258_vm1, %v5960_v51  ;;  %5030 = vmatprep.mubr.msk.f32.mxu0 %vm258_vm1, %v5661_v44 }
 0x107   : > { %4805 = vmatmul.mubr.msk.f32.gmra.mrb[24].mxu1 %vm258_vm1, %v5971_v47  ;;  %5031 = vmatmul.mubr.msk.f32.gmra.mrb[8].mxu0 %vm258_vm1, %v5675_v46 }
 0x108   : > { %4807 = vmatprep.mubr.msk.f32.mxu1 %vm258_vm1, %v5974_v43  ;;  %5033 = vmatprep.mubr.msk.f32.mxu0 %vm258_vm1, %v5681_v48 }
 0x10b   : > { %4808 = vmatmul.mubr.msk.f32.gmra.mrb[26].mxu1 %vm258_vm1, %v5985_v39  ;;  %5034 = vmatmul.mubr.msk.f32.gmra.mrb[10].mxu0 %vm258_vm1, %v5695_v50 }
 0x10c   : > { %4810 = vmatprep.mubr.msk.f32.mxu1 %vm258_vm1, %v5988_v35  ;;  %5036 = vmatprep.mubr.msk.f32.mxu0 %vm258_vm1, %v5701_v52  ;;  %v6359_v52 = vld [vmem:[%s6478_s2] ss:$0 sm:$0xff] }
 0x10f   : > { %4811 = vmatmul.mubr.msk.f32.gmra.mrb[28].mxu1 %vm258_vm1, %v5999_v62  ;;  %5037 = vmatmul.mubr.msk.f32.gmra.mrb[12].mxu0 %vm258_vm1, %v5715_v54 }
 0x110   : > { %4813 = vmatprep.mubr.msk.f32.mxu1 %vm258_vm1, %v6054_v24  ;;  %5039 = vmatprep.mubr.msk.f32.mxu0 %vm258_vm1, %v5719_v56 }
 0x113   : > { %4814 = vmatmul.mubr.msk.f32.gmra.mrb[30].mxu1 %vm258_vm1, %v6065_v25  ;;  %5040 = vmatmul.mubr.msk.f32.gmra.mrb[14].mxu0 %vm258_vm1, %v5730_v58 }
 0x114   : > { %4842 = vmatprep.mubr.msk.f32.mxu1 %vm258_vm1, %v5570_v26  ;;  %5042 = vmatprep.mubr.msk.f32.mxu0 %vm258_vm1, %v5736_v60  ;;  %v6585_v26 = vld [vmem:[#allocation27_spill] sm:$0xff] }
 0x117   : > { %4843 = vmatmul.mubr.msk.f32.vlgmr.msra.gmra.mrb[16].mxu1 %vm258_vm1, %v6557_v11  ;;  %5043 = vmatmul.mubr.msk.f32.gmra.mrb[16].mxu0 %vm258_vm1, %v5754_v63 }
 0x118   : > { %4845 = vmatprep.mubr.msk.f32.mxu1 %vm258_vm1, %v6559_v13  ;;  %5045 = vmatprep.mubr.msk.f32.mxu0 %vm258_vm1, %v5762_v2 }
 0x11b   : > { %4846 = vmatmul.mubr.msk.f32.gmra.mrb[18].mxu1 %vm258_vm1, %v6561_v15  ;;  %5046 = vmatmul.mubr.msk.f32.gmra.mrb[18].mxu0 %vm258_vm1, %v5778_v4 }
 0x11c   : > { %4848 = vmatprep.mubr.msk.f32.mxu1 %vm258_vm1, %v6563_v17  ;;  %5048 = vmatprep.mubr.msk.f32.mxu0 %vm258_vm1, %v5784_v6 }
 0x11f   : > { %4849 = vmatmul.mubr.msk.f32.gmra.mrb[20].mxu1 %vm258_vm1, %v6565_v19  ;;  %5049 = vmatmul.mubr.msk.f32.gmra.mrb[20].mxu0 %vm258_vm1, %v5798_v9 }
 0x120   : > { %4851 = vmatprep.mubr.msk.f32.mxu1 %vm258_vm1, %v6567_v21  ;;  %5051 = vmatprep.mubr.msk.f32.mxu0 %vm258_vm1, %v5804_v55 }
 0x123   : > { %4852 = vmatmul.mubr.msk.f32.gmra.mrb[22].mxu1 %vm258_vm1, %v6569_v22  ;;  %5052 = vmatmul.mubr.msk.f32.gmra.mrb[22].mxu0 %vm258_vm1, %v5818_v53 }
 0x124   : > { %4854 = vmatprep.mubr.msk.f32.mxu1 %vm258_vm1, %v6571_v37  ;;  %5054 = vmatprep.mubr.msk.f32.mxu0 %vm258_vm1, %v5824_v49 }
 0x127   : > { %4855 = vmatmul.mubr.msk.f32.gmra.mrb[24].mxu1 %vm258_vm1, %v6573_v33  ;;  %5055 = vmatmul.mubr.msk.f32.gmra.mrb[24].mxu0 %vm258_vm1, %v5838_v45 }
 0x128   : > { %4857 = vmatprep.mubr.msk.f32.mxu1 %vm258_vm1, %v6575_v12  ;;  %5057 = vmatprep.mubr.msk.f32.mxu0 %vm258_vm1, %v5844_v41 }
 0x12b   : > { %4858 = vmatmul.mubr.msk.f32.gmra.mrb[26].mxu1 %vm258_vm1, %v6577_v16  ;;  %5058 = vmatmul.mubr.msk.f32.gmra.mrb[26].mxu0 %vm258_vm1, %v6585_v26 }
 0x12c   : > { %4860 = vmatprep.mubr.msk.f32.mxu1 %vm258_vm1, %v6579_v20  ;;  %5060 = vmatprep.mubr.msk.f32.mxu0 %vm258_vm1, %v6586_v27 }
 0x12f   : > { %4861 = vmatmul.mubr.msk.f32.gmra.mrb[28].mxu1 %vm258_vm1, %v6587_v30  ;;  %5061 = vmatmul.mubr.msk.f32.gmra.mrb[28].mxu0 %vm258_vm1, %v6588_v31 }
 0x130   : > { %4863 = vmatprep.mubr.msk.f32.mxu1 %vm258_vm1, %v6192_v1  ;;  %5063 = vmatprep.mubr.msk.f32.mxu0 %vm258_vm1, %v4281_v29 }
 0x133   : > { %4864 = vmatmul.mubr.msk.f32.gmra.mrb[30].mxu1 %vm258_vm1, %v6203_v14  ;;  %5064 = vmatmul.mubr.msk.f32.gmra.mrb[30].mxu0 %vm258_vm1, %v4282_v32 }
 0x1aa   : > { %v4770_v34 = vpop.f32.mrb[0].mxu1 }
 0x1ab   : > { %v1498_v35 = vpop.f32.mrb[1].mxu1 }
 0x1ae   : > { %v4773_v36 = vpop.f32.mrb[2].mxu1 }
 0x1af   : > { %v1508_v38 = vpop.f32.mrb[3].mxu1 }
 0x1b2   : > { %v4776_v39 = vpop.f32.mrb[4].mxu1 }
 0x1b3   : > { %v1518_v40 = vpop.f32.mrb[5].mxu1 }
 0x1b6   : > { %v4779_v41 = vpop.f32.mrb[6].mxu1 }
 0x1b7   : > { %v1528_v42 = vpop.f32.mrb[7].mxu1 }
 0x1ba   : > { %v4782_v43 = vpop.f32.mrb[8].mxu1 }
 0x1bb   : > { %v1538_v44 = vpop.f32.mrb[9].mxu1 }
 0x1be   : > { %v4785_v45 = vpop.f32.mrb[10].mxu1 }
 0x1bf   : > { %v6345_v46 = vpop.f32.mrb[11].mxu1 }
 0x1c2   : > { %v6348_v47 = vpop.f32.mrb[12].mxu1 }
 0x1c3   : > { %v6350_v48 = vpop.f32.mrb[13].mxu1 }
 0x1c6   : > { %v6352_v49 = vpop.f32.mrb[14].mxu1 }
 0x1c7   : > { %v6354_v50 = vpop.f32.mrb[15].mxu1 }
 0x1ca   : > { %v5020_v51 = vpop.f32.mrb[0].mxu0 }
 0x1cb   : > { %v5068_v53 = vadd.f32 %v5020_v51, %v4770_v34  ;;  %v3446_v54 = vpop.f32.mrb[1].mxu0 }
 0x1cc   : > { %v5069_v56 = vadd.f32 %v3446_v54, %v1498_v35 }
 0x1cd   : > { %v3645_v58 = vadd.f32 %v5068_v53, %v6359_v52 }
 0x1ce   : > { %v3644_v59 = vadd.f32 %v5069_v56, %v6359_v52  ;;  %v5023_v60 = vpop.f32.mrb[2].mxu0 }
 0x1cf   : > { %v3677_v62 = vmax.f32 %v3645_v58, 0.0  ;;  %v5070_v63 = vadd.f32 %v5023_v60, %v4773_v36  ;;  %v3456_v0 = vpop.f32.mrb[3].mxu0 }
 0x1d0   : > { %v3676_v2 = vmax.f32 %v3644_v59, 0.0  ;;  %v5071_v4 = vadd.f32 %v3456_v0, %v1508_v38 }
 0x1d1   : > { %3710 = vst.msk [vmem:[%s6365_s21 + $0x8] sm:$0xff] %vm3708_vm2, %v3677_v62  ;;  %v3647_v5 = vadd.f32 %v5070_v63, %v6359_v52 }
 0x1d2   : > { %3709 = vst.msk [vmem:[%s6365_s21] sm:$0xff] %vm3708_vm2, %v3676_v2  ;;  %v3646_v6 = vadd.f32 %v5071_v4, %v6359_v52  ;;  %v5026_v7 = vpop.f32.mrb[4].mxu0 }
 0x1d3   : > { %v3679_v9 = vmax.f32 %v3647_v5, 0.0  ;;  %v5072_v10 = vadd.f32 %v5026_v7, %v4776_v39  ;;  %v3466_v55 = vpop.f32.mrb[5].mxu0 }
 0x1d4   : > { %v3678_v57 = vmax.f32 %v3646_v6, 0.0  ;;  %v5073_v28 = vadd.f32 %v3466_v55, %v1518_v40 }
 0x1d5   : > { %3712 = vst.msk [vmem:[%s6365_s21 + $0x18] sm:$0xff] %vm3708_vm2, %v3679_v9  ;;  %v3649_v24 = vadd.f32 %v5072_v10, %v6359_v52 }
 0x1d6   : > { %3711 = vst.msk [vmem:[%s6365_s21 + $0x10] sm:$0xff] %vm3708_vm2, %v3678_v57  ;;  %v3648_v25 = vadd.f32 %v5073_v28, %v6359_v52  ;;  %v5029_v8 = vpop.f32.mrb[6].mxu0 }
 0x1d7   : > { %v3681_v11 = vmax.f32 %v3649_v24, 0.0  ;;  %v5074_v13 = vadd.f32 %v5029_v8, %v4779_v41  ;;  %v3476_v15 = vpop.f32.mrb[7].mxu0 }
 0x1d8   : > { %v3680_v17 = vmax.f32 %v3648_v25, 0.0  ;;  %v5075_v19 = vadd.f32 %v3476_v15, %v1528_v42 }
 0x1d9   : > { %3714 = vst.msk [vmem:[%s6365_s21 + $0x28] sm:$0xff] %vm3708_vm2, %v3681_v11  ;;  %v3651_v21 = vadd.f32 %v5074_v13, %v6359_v52 }
 0x1da   : > { %3713 = vst.msk [vmem:[%s6365_s21 + $0x20] sm:$0xff] %vm3708_vm2, %v3680_v17  ;;  %v3650_v22 = vadd.f32 %v5075_v19, %v6359_v52  ;;  %v5032_v37 = vpop.f32.mrb[8].mxu0 }
 0x1db   : > { %v3683_v33 = vmax.f32 %v3651_v21, 0.0  ;;  %v5076_v12 = vadd.f32 %v5032_v37, %v4782_v43  ;;  %v3486_v16 = vpop.f32.mrb[9].mxu0 }
 0x1dc   : > { %v3682_v20 = vmax.f32 %v3650_v22, 0.0  ;;  %v5077_v1 = vadd.f32 %v3486_v16, %v1538_v44 }
 0x1dd   : > { %3716 = vst.msk [vmem:[%s6365_s21 + $0x38] sm:$0xff] %vm3708_vm2, %v3683_v33  ;;  %v3653_v3 = vadd.f32 %v5076_v12, %v6359_v52 }
 0x1de   : > { %3715 = vst.msk [vmem:[%s6365_s21 + $0x30] sm:$0xff] %vm3708_vm2, %v3682_v20  ;;  %v3652_v61 = vadd.f32 %v5077_v1, %v6359_v52  ;;  %v5035_v14 = vpop.f32.mrb[10].mxu0 }
 0x1df   : > { %v3685_v18 = vmax.f32 %v3653_v3, 0.0  ;;  %v5078_v23 = vadd.f32 %v5035_v14, %v4785_v45  ;;  %v3496_v26 = vpop.f32.mrb[11].mxu0 }
 0x1e0   : > { %v3684_v27 = vmax.f32 %v3652_v61, 0.0  ;;  %v5079_v29 = vadd.f32 %v3496_v26, %v6345_v46 }
 0x1e1   : > { %3718 = vst.msk [vmem:[%s6365_s21 + $0x48] sm:$0xff] %vm3708_vm2, %v3685_v18  ;;  %v3655_v30 = vadd.f32 %v5078_v23, %v6359_v52 }
 0x1e2   : > { %3717 = vst.msk [vmem:[%s6365_s21 + $0x40] sm:$0xff] %vm3708_vm2, %v3684_v27  ;;  %v3654_v31 = vadd.f32 %v5079_v29, %v6359_v52  ;;  %v5038_v32 = vpop.f32.mrb[12].mxu0 }
 0x1e3   : > { %v3687_v34 = vmax.f32 %v3655_v30, 0.0  ;;  %v5080_v35 = vadd.f32 %v5038_v32, %v6348_v47  ;;  %v3506_v36 = vpop.f32.mrb[13].mxu0 }
 0x1e4   : > { %v3686_v38 = vmax.f32 %v3654_v31, 0.0  ;;  %v5081_v39 = vadd.f32 %v3506_v36, %v6350_v48 }
 0x1e5   : > { %3720 = vst.msk [vmem:[%s6365_s21 + $0x58] sm:$0xff] %vm3708_vm2, %v3687_v34  ;;  %v3657_v40 = vadd.f32 %v5080_v35, %v6359_v52 }
 0x1e6   : > { %3719 = vst.msk [vmem:[%s6365_s21 + $0x50] sm:$0xff] %vm3708_vm2, %v3686_v38  ;;  %v3656_v41 = vadd.f32 %v5081_v39, %v6359_v52  ;;  %v5041_v42 = vpop.f32.mrb[14].mxu0 }
 0x1e7   : > { %v3689_v43 = vmax.f32 %v3657_v40, 0.0  ;;  %v5082_v44 = vadd.f32 %v5041_v42, %v6352_v49  ;;  %v3516_v45 = vpop.f32.mrb[15].mxu0 }
 0x1e8   : > { %v3688_v46 = vmax.f32 %v3656_v41, 0.0  ;;  %v5083_v47 = vadd.f32 %v3516_v45, %v6354_v50 }
 0x1e9   : > { %3722 = vst.msk [vmem:[%s6365_s21 + $0x68] sm:$0xff] %vm3708_vm2, %v3689_v43  ;;  %v3659_v48 = vadd.f32 %v5082_v44, %v6359_v52 }
 0x1ea   : > { %3721 = vst.msk [vmem:[%s6365_s21 + $0x60] sm:$0xff] %vm3708_vm2, %v3688_v46  ;;  %v3658_v51 = vadd.f32 %v5083_v47, %v6359_v52  ;;  %v4844_v53 = vpop.f32.mrb[16].mxu1  ;;  %v5044_v54 = vpop.f32.mrb[16].mxu0 }
 0x1eb   : > { %v3691_v56 = vmax.f32 %v3659_v48, 0.0  ;;  %v5084_v58 = vadd.f32 %v5044_v54, %v4844_v53  ;;  %v1967_v59 = vpop.f32.mrb[17].mxu1  ;;  %v3526_v49 = vpop.f32.mrb[17].mxu0 }
 0x1ec   : > { %v3690_v60 = vmax.f32 %v3658_v51, 0.0  ;;  %v5085_v62 = vadd.f32 %v3526_v49, %v1967_v59 }
 0x1ed   : > { %3724 = vst.msk [vmem:[%s6365_s21 + $0x78] sm:$0xff] %vm3708_vm2, %v3691_v56  ;;  %v3661_v50 = vadd.f32 %v5084_v58, %v6359_v52 }
 0x1ee   : > { %3723 = vst.msk [vmem:[%s6365_s21 + $0x70] sm:$0xff] %vm3708_vm2, %v3690_v60  ;;  %v3660_v63 = vadd.f32 %v5085_v62, %v6359_v52  ;;  %v4847_v0 = vpop.f32.mrb[18].mxu1  ;;  %v5047_v2 = vpop.f32.mrb[18].mxu0 }
 0x1ef   : > { %v3693_v4 = vmax.f32 %v3661_v50, 0.0  ;;  %v5086_v5 = vadd.f32 %v5047_v2, %v4847_v0  ;;  %v1977_v6 = vpop.f32.mrb[19].mxu1  ;;  %v3536_v7 = vpop.f32.mrb[19].mxu0 }
 0x1f0   : > { %v3692_v9 = vmax.f32 %v3660_v63, 0.0  ;;  %v5087_v10 = vadd.f32 %v3536_v7, %v1977_v6 }
 0x1f1   : > { %3726 = vst.msk [vmem:[%s6365_s21 + $0x88] sm:$0xff] %vm3708_vm2, %v3693_v4  ;;  %v3663_v55 = vadd.f32 %v5086_v5, %v6359_v52 }
 0x1f2   : > { %3725 = vst.msk [vmem:[%s6365_s21 + $0x80] sm:$0xff] %vm3708_vm2, %v3692_v9  ;;  %v3662_v57 = vadd.f32 %v5087_v10, %v6359_v52  ;;  %v4850_v28 = vpop.f32.mrb[20].mxu1  ;;  %v5050_v24 = vpop.f32.mrb[20].mxu0 }
 0x1f3   : > { %v3695_v25 = vmax.f32 %v3663_v55, 0.0  ;;  %v5088_v8 = vadd.f32 %v5050_v24, %v4850_v28  ;;  %v1987_v11 = vpop.f32.mrb[21].mxu1  ;;  %v3546_v13 = vpop.f32.mrb[21].mxu0 }
 0x1f4   : > { %v3694_v15 = vmax.f32 %v3662_v57, 0.0  ;;  %v5089_v17 = vadd.f32 %v3546_v13, %v1987_v11 }
 0x1f5   : > { %3728 = vst.msk [vmem:[%s6365_s21 + $0x98] sm:$0xff] %vm3708_vm2, %v3695_v25  ;;  %v3665_v19 = vadd.f32 %v5088_v8, %v6359_v52 }
 0x1f6   : > { %3727 = vst.msk [vmem:[%s6365_s21 + $0x90] sm:$0xff] %vm3708_vm2, %v3694_v15  ;;  %v3664_v21 = vadd.f32 %v5089_v17, %v6359_v52  ;;  %v4853_v22 = vpop.f32.mrb[22].mxu1  ;;  %v5053_v37 = vpop.f32.mrb[22].mxu0 }
 0x1f7   : > { %v3697_v33 = vmax.f32 %v3665_v19, 0.0  ;;  %v5090_v12 = vadd.f32 %v5053_v37, %v4853_v22  ;;  %v1997_v16 = vpop.f32.mrb[23].mxu1  ;;  %v3556_v20 = vpop.f32.mrb[23].mxu0 }
 0x1f8   : > { %v3696_v1 = vmax.f32 %v3664_v21, 0.0  ;;  %v5091_v3 = vadd.f32 %v3556_v20, %v1997_v16 }
 0x1f9   : > { %3730 = vst.msk [vmem:[%s6365_s21 + $0xa8] sm:$0xff] %vm3708_vm2, %v3697_v33  ;;  %v3667_v61 = vadd.f32 %v5090_v12, %v6359_v52 }
 0x1fa   : > { %3729 = vst.msk [vmem:[%s6365_s21 + $0xa0] sm:$0xff] %vm3708_vm2, %v3696_v1  ;;  %v3666_v14 = vadd.f32 %v5091_v3, %v6359_v52  ;;  %v4856_v18 = vpop.f32.mrb[24].mxu1  ;;  %v5056_v23 = vpop.f32.mrb[24].mxu0 }
 0x1fb   : > { %v3699_v26 = vmax.f32 %v3667_v61, 0.0  ;;  %v5092_v27 = vadd.f32 %v5056_v23, %v4856_v18  ;;  %v2007_v29 = vpop.f32.mrb[25].mxu1  ;;  %v3566_v30 = vpop.f32.mrb[25].mxu0 }
 0x1fc   : > { %v3698_v31 = vmax.f32 %v3666_v14, 0.0  ;;  %v5093_v32 = vadd.f32 %v3566_v30, %v2007_v29 }
 0x1fd   : > { %3732 = vst.msk [vmem:[%s6365_s21 + $0xb8] sm:$0xff] %vm3708_vm2, %v3699_v26  ;;  %v3669_v34 = vadd.f32 %v5092_v27, %v6359_v52 }
 0x1fe   : > { %3731 = vst.msk [vmem:[%s6365_s21 + $0xb0] sm:$0xff] %vm3708_vm2, %v3698_v31  ;;  %v3668_v35 = vadd.f32 %v5093_v32, %v6359_v52  ;;  %v4859_v36 = vpop.f32.mrb[26].mxu1  ;;  %v5059_v38 = vpop.f32.mrb[26].mxu0 }
 0x1ff   : > { %v3701_v39 = vmax.f32 %v3669_v34, 0.0  ;;  %v5094_v40 = vadd.f32 %v5059_v38, %v4859_v36  ;;  %v2017_v41 = vpop.f32.mrb[27].mxu1  ;;  %v3576_v42 = vpop.f32.mrb[27].mxu0 }
 0x200   : > { %v3700_v43 = vmax.f32 %v3668_v35, 0.0  ;;  %v5095_v44 = vadd.f32 %v3576_v42, %v2017_v41 }
 0x201   : > { %3734 = vst.msk [vmem:[%s6365_s21 + $0xc8] sm:$0xff] %vm3708_vm2, %v3701_v39  ;;  %v3671_v45 = vadd.f32 %v5094_v40, %v6359_v52 }
 0x202   : > { %3733 = vst.msk [vmem:[%s6365_s21 + $0xc0] sm:$0xff] %vm3708_vm2, %v3700_v43  ;;  %v3670_v46 = vadd.f32 %v5095_v44, %v6359_v52  ;;  %v4862_v47 = vpop.f32.mrb[28].mxu1  ;;  %v5062_v48 = vpop.f32.mrb[28].mxu0 }
 0x203   : > { %v3703_v51 = vmax.f32 %v3671_v45, 0.0  ;;  %v5096_v53 = vadd.f32 %v5062_v48, %v4862_v47  ;;  %v2027_v54 = vpop.f32.mrb[29].mxu1  ;;  %v3586_v56 = vpop.f32.mrb[29].mxu0 }
 0x204   : > { %v3702_v58 = vmax.f32 %v3670_v46, 0.0  ;;  %v5097_v59 = vadd.f32 %v3586_v56, %v2027_v54 }
 0x205   : > { %3736 = vst.msk [vmem:[%s6365_s21 + $0xd8] sm:$0xff] %vm3708_vm2, %v3703_v51  ;;  %v3673_v49 = vadd.f32 %v5096_v53, %v6359_v52 }
 0x206   : > { %3735 = vst.msk [vmem:[%s6365_s21 + $0xd0] sm:$0xff] %vm3708_vm2, %v3702_v58  ;;  %v3672_v60 = vadd.f32 %v5097_v59, %v6359_v52  ;;  %v4865_v62 = vpop.f32.mrb[30].mxu1  ;;  %v5065_v50 = vpop.f32.mrb[30].mxu0 }
 0x207   : > { %v3705_v63 = vmax.f32 %v3673_v49, 0.0  ;;  %v5098_v0 = vadd.f32 %v5065_v50, %v4865_v62  ;;  %v2037_v2 = vpop.f32.mrb[31].mxu1  ;;  %v3596_v4 = vpop.f32.mrb[31].mxu0 }
 0x208   : > { %v3704_v5 = vmax.f32 %v3672_v60, 0.0  ;;  %v5099_v6 = vadd.f32 %v3596_v4, %v2037_v2 }
 0x209   : > { %3738 = vst.msk [vmem:[%s6365_s21 + $0xe8] sm:$0xff] %vm3708_vm2, %v3705_v63  ;;  %v3675_v7 = vadd.f32 %v5098_v0, %v6359_v52 }
 0x20a   : > { %3737 = vst.msk [vmem:[%s6365_s21 + $0xe0] sm:$0xff] %vm3708_vm2, %v3704_v5  ;;  %v3674_v9 = vadd.f32 %v5099_v6, %v6359_v52 }
 0x20b   : > { %v3707_v10 = vmax.f32 %v3675_v7, 0.0 }
 0x20c   : > { %v3706_v55 = vmax.f32 %v3674_v9, 0.0 }
 0x20d   : > { %3740 = vst.msk [vmem:[%s6365_s21 + $0xf8] sm:$0xff] %vm3708_vm2, %v3707_v10 }
 0x20e   : > { %3739 = vst.msk [vmem:[%s6365_s21 + $0xf0] sm:$0xff] %vm3708_vm2, %v3706_v55 }
 0x20f PF: > { %s13_s14 = sadd.s32 1, %s5371_s14   ;;  %s6589_s12 = smov %s5367_s13 }
 0x210   : > { %p10_p6 = scmp.ge.s32.totalorder %s13_s14, 4   ;;  %s6590_s13 = smov %s6592_s15 }
 0x212   :  { %12 = sbr.rel (!%p10_p6) target bundleno = 2 (0x2), region = 65 }

</bundles_post_ra>
